<compile_context>
chip_gen: v7x
topology: tpu7x:2x2x1
jax: 0.10.0
libtpu: 0.0.40
codegen_flags: <defaults>
</compile_context>

<pallas_src>
import jax
import jax.numpy as jnp
from jax.experimental import pallas as pl
from jax.experimental.pallas import tpu as pltpu

# Lane offsets inside the packed (1, _SLAB_W) f32 bias/vector slab (128-aligned).
_OFF_B1, _OFF_B2, _OFF_B3 = 0, 128, 256          # widths 32 / 64 / 128
_OFF_B4, _OFF_B5 = 384, 640                      # widths 256 / 256
_OFF_BF1, _OFF_BF2, _OFF_BF3 = 896, 1024, 1152   # widths 128 / 64 / 1
_OFF_WF3 = 1280                                  # fc3 weight row, width 64
_SLAB_W = 1408


def _relu(x):
    return jnp.maximum(x, 0.0)


def _rowmax(a):
    """Max over rows -> (1, C).  Pairwise VPU maximum tree down to 16 rows, then
    one small cross-sublane reduce (keeps the XLU nearly idle). Exact math."""
    n = a.shape[0]
    while n > 16 and n % 2 == 0:
        h = n // 2
        a = jnp.maximum(a[:h, :], a[h:, :])
        n = h
    # Final tiny reduce in f32 (exact for bf16 inputs), cast back to input dtype.
    return jnp.max(a.astype(jnp.float32), axis=0, keepdims=True).astype(a.dtype)


def transformer_kernel(x_ref,      # (N, 8)    f32  (Cin zero-padded 3 -> 8)
                       bias_ref,   # (1, 1408) f32  packed biases + fc3 row
                       w1_ref,     # (8, 32)   f32  (rows zero-padded 3 -> 8)
                       w2_ref,     # (32, 64)  bf16
                       w3_ref,     # (64, 128) bf16
                       w4_ref,     # (256,256) bf16 (rows 0:128 local, 128:256 global)
                       w5_ref,     # (256,256) bf16
                       wf1_ref,    # (256,128) f32
                       wf2_ref,    # (128, 64) f32
                       out_ref):   # (1, 1, 1) f32
    # ---- first PointNet (per-point layers 1..3) for one batch of N points ----
    x = x_ref[...]                                                      # (N, 8)
    h = jnp.dot(x, w1_ref[...], preferred_element_type=jnp.float32)     # (N, 32)
    h = _relu(h + bias_ref[:, _OFF_B1:_OFF_B1 + 32]).astype(jnp.bfloat16)

    h = jnp.dot(h, w2_ref[...], preferred_element_type=jnp.float32)     # (N, 64)
    h = _relu(h + bias_ref[:, _OFF_B2:_OFF_B2 + 64]).astype(jnp.bfloat16)

    first = jnp.dot(h, w3_ref[...], preferred_element_type=jnp.float32)  # (N,128)
    first = _relu(first + bias_ref[:, _OFF_B3:_OFF_B3 + 128]).astype(jnp.bfloat16)

    feat1 = _rowmax(first)                                               # (1,128)

    # ---- second PointNet, layer 4: algebraic split of the channel concat ----
    #   concat([first, bcast(feat1)]) @ w4 == first @ w4[:128] + feat1 @ w4[128:]
    z_local = jnp.dot(first, w4_ref[0:128, :],
                      preferred_element_type=jnp.float32)                # (N,256)
    z_global = jnp.dot(feat1, w4_ref[128:256, :],
                       preferred_element_type=jnp.float32)               # (1,256)
    z_global = z_global + bias_ref[:, _OFF_B4:_OFF_B4 + 256]             # fold bias
    g = _relu(z_local + z_global).astype(jnp.bfloat16)                   # (N,256)

    second = jnp.dot(g, w5_ref[...], preferred_element_type=jnp.float32)  # (N,256)
    second = _relu(second + bias_ref[:, _OFF_B5:_OFF_B5 + 256])           # f32

    feat2 = _rowmax(second)                                               # (1,256)

    # ---- FC head (single row per batch; f32, negligible MXU work) ----
    f = jnp.dot(feat2, wf1_ref[...], preferred_element_type=jnp.float32)  # (1,128)
    f = _relu(f + bias_ref[:, _OFF_BF1:_OFF_BF1 + 128])
    f = jnp.dot(f, wf2_ref[...], preferred_element_type=jnp.float32)      # (1, 64)
    f = _relu(f + bias_ref[:, _OFF_BF2:_OFF_BF2 + 64])

    # fc3 (64 -> 1): VPU multiply + one lane reduce instead of a 1-lane MXU pass.
    z = jnp.sum(f * bias_ref[:, _OFF_WF3:_OFF_WF3 + 64], axis=-1, keepdims=True)
    z = z + bias_ref[:, _OFF_BF3:_OFF_BF3 + 1]
    out_ref[...] = jnp.tanh(z).reshape(1, 1, 1)                           # sin_theta


def init_params(key):
    """Deterministic params. BN (eval-mode) gamma/beta/mean/var are folded into
    effective (w, b) per layer; fc3 has no normalization/activation."""
    eps = 1e-5
    layer_defs = [(3, 32, True), (32, 64, True), (64, 128, True),     # first pointnet
                  (256, 256, True), (256, 256, True),                 # second pointnet
                  (256, 128, True), (128, 64, True),                  # fc1, fc2
                  (64, 1, False)]                                     # fc3
    params = []
    for cin, cout, has_bn in layer_defs:
        key, k1, k2, k3, k4, k5, k6 = jax.random.split(key, 7)
        w = jax.random.normal(k1, (cin, cout), jnp.float32) / jnp.sqrt(float(cin))
        b = 0.1 * jax.random.normal(k2, (cout,), jnp.float32)
        if has_bn:
            gamma = 1.0 + 0.1 * jax.random.normal(k3, (cout,), jnp.float32)
            beta = 0.1 * jax.random.normal(k4, (cout,), jnp.float32)
            rmean = 0.1 * jax.random.normal(k5, (cout,), jnp.float32)
            rvar = jnp.abs(1.0 + 0.1 * jax.random.normal(k6, (cout,), jnp.float32))
            scale = gamma / jnp.sqrt(rvar + eps)
            w = w * scale[None, :]
            b = (b - rmean) * scale + beta
        params.append((w, b.reshape(1, cout)))
    return params


def transformer_forward(x_bcn, params):
    """x_bcn: (B, 3, N) points, PyTorch layout. Returns (B, 1) sin_theta."""
    x = jnp.transpose(x_bcn, (0, 2, 1)).astype(jnp.float32)          # (B, N, 3)
    B, N, _ = x.shape
    x_pad = jnp.pad(x, ((0, 0), (0, 0), (0, 5))).reshape(B * N, 8)   # Cin 3 -> 8

    (w1, b1), (w2, b2), (w3, b3), (w4, b4), (w5, b5), \
        (wf1, bf1), (wf2, bf2), (wf3, bf3) = params

    # Layer-1 weight zero-padded to K=8 so layer 1 is one cheap MXU pass.
    w1p = jnp.pad(w1, ((0, 5), (0, 0)))                              # (8, 32) f32
    # Per-point layers use bf16 operands (f32 MXU accumulation).
    w2b = w2.astype(jnp.bfloat16)
    w3b = w3.astype(jnp.bfloat16)
    w4b = w4.astype(jnp.bfloat16)
    w5b = w5.astype(jnp.bfloat16)

    # Pack all tiny row-vectors (biases + fc3 weight row) into one lane-aligned
    # f32 slab -> a single prologue DMA instead of ~12 tile-padded ones.
    slab = jnp.zeros((1, _SLAB_W), jnp.float32)
    slab = slab.at[0, _OFF_B1:_OFF_B1 + 32].set(b1.reshape(-1))
    slab = slab.at[0, _OFF_B2:_OFF_B2 + 64].set(b2.reshape(-1))
    slab = slab.at[0, _OFF_B3:_OFF_B3 + 128].set(b3.reshape(-1))
    slab = slab.at[0, _OFF_B4:_OFF_B4 + 256].set(b4.reshape(-1))
    slab = slab.at[0, _OFF_B5:_OFF_B5 + 256].set(b5.reshape(-1))
    slab = slab.at[0, _OFF_BF1:_OFF_BF1 + 128].set(bf1.reshape(-1))
    slab = slab.at[0, _OFF_BF2:_OFF_BF2 + 64].set(bf2.reshape(-1))
    slab = slab.at[0, _OFF_BF3:_OFF_BF3 + 1].set(bf3.reshape(-1))
    slab = slab.at[0, _OFF_WF3:_OFF_WF3 + 64].set(wf3.reshape(-1))

    flat_in = [x_pad, slab, w1p, w2b, w3b, w4b, w5b, wf1, wf2]

    def const_spec(a):
        # Whole-array VMEM residency; constant block index -> fetched once.
        return pl.BlockSpec(a.shape, lambda b, _nd=a.ndim: (0,) * _nd)

    in_specs = [pl.BlockSpec((N, 8), lambda b: (b, 0))] + \
               [const_spec(a) for a in flat_in[1:]]

    # Tiny problem (~50 MFLOP, <2 MiB resident): whole-array VMEM residency;
    # the batch grid exists purely so v7x can put one batch on each TensorCore.
    out = pl.pallas_call(
        transformer_kernel,
        out_shape=jax.ShapeDtypeStruct((B, 1, 1), jnp.float32),
        grid=(B,),
        in_specs=in_specs,
        out_specs=pl.BlockSpec((1, 1, 1), lambda b: (b, 0, 0)),
        compiler_params=pltpu.CompilerParams(
            dimension_semantics=("parallel",)),
    )(*flat_in)
    return out.reshape(B, 1)


def reference_forward(x_bcn, params):
    """Pure-JAX f32 reference mirroring the PyTorch forward (eval mode)."""
    x = jnp.transpose(x_bcn, (0, 2, 1)).astype(jnp.float32)

    def layer(h, p, act=True):
        w, b = p
        z = jnp.einsum('bnc,cd->bnd', h, w) + b[None]
        return jnp.maximum(z, 0.0) if act else z

    h = layer(x, params[0])
    h = layer(h, params[1])
    first = layer(h, params[2])
    f1 = jnp.max(first, axis=1, keepdims=True)
    cat = jnp.concatenate([first, jnp.broadcast_to(f1, first.shape)], axis=-1)
    g = layer(cat, params[3])
    second = layer(g, params[4])
    f2 = jnp.max(second, axis=1)

    def fc(h, p, act):
        w, b = p
        z = h @ w + b
        return jnp.maximum(z, 0.0) if act else z

    f = fc(f2, params[5], True)
    f = fc(f, params[6], True)
    f = fc(f, params[7], False)
    return jnp.tanh(f)


if __name__ == "__main__":
    key = jax.random.PRNGKey(0)
    kx, kp = jax.random.split(key)
    B, N = 2, 128
    # PyTorch-style input: B x 3 x N points
    x = jax.random.normal(kx, (B, 3, N), jnp.float32)
    params = init_params(kp)

    out = transformer_forward(x, params)
    jax.block_until_ready(out)

    ref = reference_forward(x, params)
    assert out.shape == (B, 1)
    # Per-point layers 2-5 use bf16 operands / bf16 activation handoffs (with
    # f32 MXU accumulation); compare to the f32 reference with a matching
    # relaxed tolerance.
    err = jnp.max(jnp.abs(out - ref))
    assert err < 5e-2, f"max abs error {err}"
    # TODO(synk): training-mode dropout / batch-stat BN not modeled (eval-mode semantics).
    print("KERNEL_OK")
</pallas_src>

<mosaic_0001>
module attributes {stable_mosaic.version = 11 : i64} {
  func.func @transformer_kernel(%arg0: i32, %arg1: memref<128x8xf32, #tpu.memory_space<vmem>>, %arg2: memref<1x1408xf32, #tpu.memory_space<vmem>>, %arg3: memref<8x32xf32, #tpu.memory_space<vmem>>, %arg4: memref<32x64xbf16, #tpu.memory_space<vmem>>, %arg5: memref<64x128xbf16, #tpu.memory_space<vmem>>, %arg6: memref<256x256xbf16, #tpu.memory_space<vmem>>, %arg7: memref<256x256xbf16, #tpu.memory_space<vmem>>, %arg8: memref<256x128xf32, #tpu.memory_space<vmem>>, %arg9: memref<128x64xf32, #tpu.memory_space<vmem>>, %arg10: memref<1x1x1xf32, #tpu.memory_space<vmem>>) attributes {dimension_semantics = [#tpu.dimension_semantics<parallel>], iteration_bounds = array<i64: 2>, scalar_prefetch = 0 : i64, scratch_operands = 0 : i64, tpu.core_type = #tpu.core_type<tc>, window_params = [{transform_indices = @transform_0, window_bounds = array<i64: 128, 8>}, {pipeline_mode = #tpu.pipeline_mode<synchronous>, transform_indices = @transform_1, window_bounds = array<i64: 1, 1408>}, {pipeline_mode = #tpu.pipeline_mode<synchronous>, transform_indices = @transform_2, window_bounds = array<i64: 8, 32>}, {pipeline_mode = #tpu.pipeline_mode<synchronous>, transform_indices = @transform_3, window_bounds = array<i64: 32, 64>}, {pipeline_mode = #tpu.pipeline_mode<synchronous>, transform_indices = @transform_4, window_bounds = array<i64: 64, 128>}, {pipeline_mode = #tpu.pipeline_mode<synchronous>, transform_indices = @transform_5, window_bounds = array<i64: 256, 256>}, {pipeline_mode = #tpu.pipeline_mode<synchronous>, transform_indices = @transform_6, window_bounds = array<i64: 256, 256>}, {pipeline_mode = #tpu.pipeline_mode<synchronous>, transform_indices = @transform_7, window_bounds = array<i64: 256, 128>}, {pipeline_mode = #tpu.pipeline_mode<synchronous>, transform_indices = @transform_8, window_bounds = array<i64: 128, 64>}, {transform_indices = @transform_9, window_bounds = array<i64: 1, 1, 1>}]} {
    %c0 = arith.constant 0 : index
    %c0_0 = arith.constant 0 : index
    %0 = vector.load %arg1[%c0, %c0_0] : memref<128x8xf32, #tpu.memory_space<vmem>>, vector<128x8xf32>
    %c0_1 = arith.constant 0 : index
    %c0_2 = arith.constant 0 : index
    %1 = vector.load %arg3[%c0_1, %c0_2] : memref<8x32xf32, #tpu.memory_space<vmem>>, vector<8x32xf32>
    %cst = arith.constant dense<0.000000e+00> : vector<128x32xf32>
    %2 = tpu.matmul %0, %1, %cst {dimension_numbers = #tpu.dot_dimension_numbers<[1], [0], [0], [1], [0, 0, 1, 1], [], []>} : vector<128x8xf32>, vector<8x32xf32>, vector<128x32xf32> -> vector<128x32xf32>
    %c0_3 = arith.constant 0 : index
    %c0_4 = arith.constant 0 : index
    %3 = vector.load %arg2[%c0_3, %c0_4] : memref<1x1408xf32, #tpu.memory_space<vmem>>, vector<1x32xf32>
    %4 = vector.broadcast %3 : vector<1x32xf32> to vector<128x32xf32>
    %5 = arith.addf %2, %4 : vector<128x32xf32>
    %cst_5 = arith.constant 0.000000e+00 : f32
    %6 = vector.broadcast %cst_5 : f32 to vector<128x32xf32>
    %7 = arith.maximumf %5, %6 : vector<128x32xf32>
    %8 = arith.truncf %7 : vector<128x32xf32> to vector<128x32xbf16>
    %c0_6 = arith.constant 0 : index
    %c0_7 = arith.constant 0 : index
    %9 = vector.load %arg4[%c0_6, %c0_7] : memref<32x64xbf16, #tpu.memory_space<vmem>>, vector<32x64xbf16>
    %cst_8 = arith.constant dense<0.000000e+00> : vector<128x64xf32>
    %10 = tpu.matmul %8, %9, %cst_8 {dimension_numbers = #tpu.dot_dimension_numbers<[1], [0], [0], [1], [0, 0, 1, 1], [], []>} : vector<128x32xbf16>, vector<32x64xbf16>, vector<128x64xf32> -> vector<128x64xf32>
    %c0_9 = arith.constant 0 : index
    %c128 = arith.constant 128 : index
    %11 = vector.load %arg2[%c0_9, %c128] : memref<1x1408xf32, #tpu.memory_space<vmem>>, vector<1x64xf32>
    %12 = vector.broadcast %11 : vector<1x64xf32> to vector<128x64xf32>
    %13 = arith.addf %10, %12 : vector<128x64xf32>
    %cst_10 = arith.constant 0.000000e+00 : f32
    %14 = vector.broadcast %cst_10 : f32 to vector<128x64xf32>
    %15 = arith.maximumf %13, %14 : vector<128x64xf32>
    %16 = arith.truncf %15 : vector<128x64xf32> to vector<128x64xbf16>
    %c0_11 = arith.constant 0 : index
    %c0_12 = arith.constant 0 : index
    %17 = vector.load %arg5[%c0_11, %c0_12] : memref<64x128xbf16, #tpu.memory_space<vmem>>, vector<64x128xbf16>
    %cst_13 = arith.constant dense<0.000000e+00> : vector<128x128xf32>
    %18 = tpu.matmul %16, %17, %cst_13 {dimension_numbers = #tpu.dot_dimension_numbers<[1], [0], [0], [1], [0, 0, 1, 1], [], []>} : vector<128x64xbf16>, vector<64x128xbf16>, vector<128x128xf32> -> vector<128x128xf32>
    %c0_14 = arith.constant 0 : index
    %c256 = arith.constant 256 : index
    %19 = vector.load %arg2[%c0_14, %c256] : memref<1x1408xf32, #tpu.memory_space<vmem>>, vector<1x128xf32>
    %20 = vector.broadcast %19 : vector<1x128xf32> to vector<128x128xf32>
    %21 = arith.addf %18, %20 : vector<128x128xf32>
    %cst_15 = arith.constant 0.000000e+00 : f32
    %22 = vector.broadcast %cst_15 : f32 to vector<128x128xf32>
    %23 = arith.maximumf %21, %22 : vector<128x128xf32>
    %24 = arith.truncf %23 : vector<128x128xf32> to vector<128x128xbf16>
    %25 = vector.extract_strided_slice %24 {offsets = [0, 0], sizes = [64, 128], strides = [1, 1]} : vector<128x128xbf16> to vector<64x128xbf16>
    %26 = vector.extract_strided_slice %24 {offsets = [64, 0], sizes = [64, 128], strides = [1, 1]} : vector<128x128xbf16> to vector<64x128xbf16>
    %27 = arith.maximumf %25, %26 : vector<64x128xbf16>
    %28 = vector.extract_strided_slice %27 {offsets = [0, 0], sizes = [32, 128], strides = [1, 1]} : vector<64x128xbf16> to vector<32x128xbf16>
    %29 = vector.extract_strided_slice %27 {offsets = [32, 0], sizes = [32, 128], strides = [1, 1]} : vector<64x128xbf16> to vector<32x128xbf16>
    %30 = arith.maximumf %28, %29 : vector<32x128xbf16>
    %31 = vector.extract_strided_slice %30 {offsets = [0, 0], sizes = [16, 128], strides = [1, 1]} : vector<32x128xbf16> to vector<16x128xbf16>
    %32 = vector.extract_strided_slice %30 {offsets = [16, 0], sizes = [16, 128], strides = [1, 1]} : vector<32x128xbf16> to vector<16x128xbf16>
    %33 = arith.maximumf %31, %32 : vector<16x128xbf16>
    %34 = arith.extf %33 : vector<16x128xbf16> to vector<16x128xf32>
    %cst_16 = arith.constant dense<0xFF800000> : vector<128xf32>
    %35 = vector.multi_reduction <maximumf>, %34, %cst_16 [0] : vector<16x128xf32> to vector<128xf32>
    %36 = vector.shape_cast %35 : vector<128xf32> to vector<1x128xf32>
    %37 = arith.truncf %36 : vector<1x128xf32> to vector<1x128xbf16>
    %c0_17 = arith.constant 0 : index
    %c0_18 = arith.constant 0 : index
    %38 = vector.load %arg6[%c0_17, %c0_18] : memref<256x256xbf16, #tpu.memory_space<vmem>>, vector<128x256xbf16>
    %cst_19 = arith.constant dense<0.000000e+00> : vector<128x256xf32>
    %39 = tpu.matmul %24, %38, %cst_19 {dimension_numbers = #tpu.dot_dimension_numbers<[1], [0], [0], [1], [0, 0, 1, 1], [], []>} : vector<128x128xbf16>, vector<128x256xbf16>, vector<128x256xf32> -> vector<128x256xf32>
    %c128_20 = arith.constant 128 : index
    %c0_21 = arith.constant 0 : index
    %40 = vector.load %arg6[%c128_20, %c0_21] : memref<256x256xbf16, #tpu.memory_space<vmem>>, vector<128x256xbf16>
    %cst_22 = arith.constant dense<0.000000e+00> : vector<1x256xf32>
    %41 = tpu.matmul %37, %40, %cst_22 {dimension_numbers = #tpu.dot_dimension_numbers<[1], [0], [0], [1], [0, 0, 1, 1], [], []>} : vector<1x128xbf16>, vector<128x256xbf16>, vector<1x256xf32> -> vector<1x256xf32>
    %c0_23 = arith.constant 0 : index
    %c384 = arith.constant 384 : index
    %42 = vector.load %arg2[%c0_23, %c384] : memref<1x1408xf32, #tpu.memory_space<vmem>>, vector<1x256xf32>
    %43 = arith.addf %41, %42 : vector<1x256xf32>
    %44 = vector.broadcast %43 : vector<1x256xf32> to vector<128x256xf32>
    %45 = arith.addf %39, %44 : vector<128x256xf32>
    %cst_24 = arith.constant 0.000000e+00 : f32
    %46 = vector.broadcast %cst_24 : f32 to vector<128x256xf32>
    %47 = arith.maximumf %45, %46 : vector<128x256xf32>
    %48 = arith.truncf %47 : vector<128x256xf32> to vector<128x256xbf16>
    %c0_25 = arith.constant 0 : index
    %c0_26 = arith.constant 0 : index
    %49 = vector.load %arg7[%c0_25, %c0_26] : memref<256x256xbf16, #tpu.memory_space<vmem>>, vector<256x256xbf16>
    %cst_27 = arith.constant dense<0.000000e+00> : vector<128x256xf32>
    %50 = tpu.matmul %48, %49, %cst_27 {dimension_numbers = #tpu.dot_dimension_numbers<[1], [0], [0], [1], [0, 0, 1, 1], [], []>} : vector<128x256xbf16>, vector<256x256xbf16>, vector<128x256xf32> -> vector<128x256xf32>
    %c0_28 = arith.constant 0 : index
    %c640 = arith.constant 640 : index
    %51 = vector.load %arg2[%c0_28, %c640] : memref<1x1408xf32, #tpu.memory_space<vmem>>, vector<1x256xf32>
    %52 = vector.broadcast %51 : vector<1x256xf32> to vector<128x256xf32>
    %53 = arith.addf %50, %52 : vector<128x256xf32>
    %cst_29 = arith.constant 0.000000e+00 : f32
    %54 = vector.broadcast %cst_29 : f32 to vector<128x256xf32>
    %55 = arith.maximumf %53, %54 : vector<128x256xf32>
    %56 = vector.extract_strided_slice %55 {offsets = [0, 0], sizes = [64, 256], strides = [1, 1]} : vector<128x256xf32> to vector<64x256xf32>
    %57 = vector.extract_strided_slice %55 {offsets = [64, 0], sizes = [64, 256], strides = [1, 1]} : vector<128x256xf32> to vector<64x256xf32>
    %58 = arith.maximumf %56, %57 : vector<64x256xf32>
    %59 = vector.extract_strided_slice %58 {offsets = [0, 0], sizes = [32, 256], strides = [1, 1]} : vector<64x256xf32> to vector<32x256xf32>
    %60 = vector.extract_strided_slice %58 {offsets = [32, 0], sizes = [32, 256], strides = [1, 1]} : vector<64x256xf32> to vector<32x256xf32>
    %61 = arith.maximumf %59, %60 : vector<32x256xf32>
    %62 = vector.extract_strided_slice %61 {offsets = [0, 0], sizes = [16, 256], strides = [1, 1]} : vector<32x256xf32> to vector<16x256xf32>
    %63 = vector.extract_strided_slice %61 {offsets = [16, 0], sizes = [16, 256], strides = [1, 1]} : vector<32x256xf32> to vector<16x256xf32>
    %64 = arith.maximumf %62, %63 : vector<16x256xf32>
    %cst_30 = arith.constant dense<0xFF800000> : vector<256xf32>
    %65 = vector.multi_reduction <maximumf>, %64, %cst_30 [0] : vector<16x256xf32> to vector<256xf32>
    %66 = vector.shape_cast %65 : vector<256xf32> to vector<1x256xf32>
    %c0_31 = arith.constant 0 : index
    %c0_32 = arith.constant 0 : index
    %67 = vector.load %arg8[%c0_31, %c0_32] : memref<256x128xf32, #tpu.memory_space<vmem>>, vector<256x128xf32>
    %cst_33 = arith.constant dense<0.000000e+00> : vector<1x128xf32>
    %68 = tpu.matmul %66, %67, %cst_33 {dimension_numbers = #tpu.dot_dimension_numbers<[1], [0], [0], [1], [0, 0, 1, 1], [], []>} : vector<1x256xf32>, vector<256x128xf32>, vector<1x128xf32> -> vector<1x128xf32>
    %c0_34 = arith.constant 0 : index
    %c896 = arith.constant 896 : index
    %69 = vector.load %arg2[%c0_34, %c896] : memref<1x1408xf32, #tpu.memory_space<vmem>>, vector<1x128xf32>
    %70 = arith.addf %68, %69 : vector<1x128xf32>
    %cst_35 = arith.constant 0.000000e+00 : f32
    %71 = vector.broadcast %cst_35 : f32 to vector<1x128xf32>
    %72 = arith.maximumf %70, %71 : vector<1x128xf32>
    %c0_36 = arith.constant 0 : index
    %c0_37 = arith.constant 0 : index
    %73 = vector.load %arg9[%c0_36, %c0_37] : memref<128x64xf32, #tpu.memory_space<vmem>>, vector<128x64xf32>
    %cst_38 = arith.constant dense<0.000000e+00> : vector<1x64xf32>
    %74 = tpu.matmul %72, %73, %cst_38 {dimension_numbers = #tpu.dot_dimension_numbers<[1], [0], [0], [1], [0, 0, 1, 1], [], []>} : vector<1x128xf32>, vector<128x64xf32>, vector<1x64xf32> -> vector<1x64xf32>
    %c0_39 = arith.constant 0 : index
    %c1024 = arith.constant 1024 : index
    %75 = vector.load %arg2[%c0_39, %c1024] : memref<1x1408xf32, #tpu.memory_space<vmem>>, vector<1x64xf32>
    %76 = arith.addf %74, %75 : vector<1x64xf32>
    %cst_40 = arith.constant 0.000000e+00 : f32
    %77 = vector.broadcast %cst_40 : f32 to vector<1x64xf32>
    %78 = arith.maximumf %76, %77 : vector<1x64xf32>
    %c0_41 = arith.constant 0 : index
    %c1280 = arith.constant 1280 : index
    %79 = vector.load %arg2[%c0_41, %c1280] : memref<1x1408xf32, #tpu.memory_space<vmem>>, vector<1x64xf32>
    %80 = arith.mulf %78, %79 : vector<1x64xf32>
    %cst_42 = arith.constant dense<0.000000e+00> : vector<1xf32>
    %81 = vector.multi_reduction <add>, %80, %cst_42 [1] : vector<1x64xf32> to vector<1xf32>
    %82 = vector.shape_cast %81 : vector<1xf32> to vector<1x1xf32>
    %c0_43 = arith.constant 0 : index
    %c1152 = arith.constant 1152 : index
    %83 = vector.load %arg2[%c0_43, %c1152] : memref<1x1408xf32, #tpu.memory_space<vmem>>, vector<1x1xf32>
    %84 = arith.addf %82, %83 : vector<1x1xf32>
    %85 = math.tanh %84 : vector<1x1xf32>
    %86 = vector.shape_cast %85 : vector<1x1xf32> to vector<1x1x1xf32>
    %c0_44 = arith.constant 0 : index
    %c0_45 = arith.constant 0 : index
    %c0_46 = arith.constant 0 : index
    %87 = vector.load %arg10[%c0_44, %c0_45, %c0_46] : memref<1x1x1xf32, #tpu.memory_space<vmem>>, vector<1x1x1xf32>
    tpu.vector_store %arg10[%c0_44, %c0_45, %c0_46], %86 {strides = array<i32>} : memref<1x1x1xf32, #tpu.memory_space<vmem>>, vector<1x1x1xf32>,
    return
  }
  func.func @transform_0(%arg0: i32) -> (i32, i32) {
    %c0_i32 = arith.constant 0 : i32
    %c0_i32_0 = arith.constant 0 : i32
    return %arg0, %c0_i32 : i32, i32
  }
  func.func @transform_1(%arg0: i32) -> (i32, i32) {
    %c0_i32 = arith.constant 0 : i32
    %c0_i32_0 = arith.constant 0 : i32
    %c0_i32_1 = arith.constant 0 : i32
    return %c0_i32, %c0_i32_0 : i32, i32
  }
  func.func @transform_2(%arg0: i32) -> (i32, i32) {
    %c0_i32 = arith.constant 0 : i32
    %c0_i32_0 = arith.constant 0 : i32
    %c0_i32_1 = arith.constant 0 : i32
    return %c0_i32, %c0_i32_0 : i32, i32
  }
  func.func @transform_3(%arg0: i32) -> (i32, i32) {
    %c0_i32 = arith.constant 0 : i32
    %c0_i32_0 = arith.constant 0 : i32
    %c0_i32_1 = arith.constant 0 : i32
    return %c0_i32, %c0_i32_0 : i32, i32
  }
  func.func @transform_4(%arg0: i32) -> (i32, i32) {
    %c0_i32 = arith.constant 0 : i32
    %c0_i32_0 = arith.constant 0 : i32
    %c0_i32_1 = arith.constant 0 : i32
    return %c0_i32, %c0_i32_0 : i32, i32
  }
  func.func @transform_5(%arg0: i32) -> (i32, i32) {
    %c0_i32 = arith.constant 0 : i32
    %c0_i32_0 = arith.constant 0 : i32
    %c0_i32_1 = arith.constant 0 : i32
    return %c0_i32, %c0_i32_0 : i32, i32
  }
  func.func @transform_6(%arg0: i32) -> (i32, i32) {
    %c0_i32 = arith.constant 0 : i32
    %c0_i32_0 = arith.constant 0 : i32
    %c0_i32_1 = arith.constant 0 : i32
    return %c0_i32, %c0_i32_0 : i32, i32
  }
  func.func @transform_7(%arg0: i32) -> (i32, i32) {
    %c0_i32 = arith.constant 0 : i32
    %c0_i32_0 = arith.constant 0 : i32
    %c0_i32_1 = arith.constant 0 : i32
    return %c0_i32, %c0_i32_0 : i32, i32
  }
  func.func @transform_8(%arg0: i32) -> (i32, i32) {
    %c0_i32 = arith.constant 0 : i32
    %c0_i32_0 = arith.constant 0 : i32
    %c0_i32_1 = arith.constant 0 : i32
    return %c0_i32, %c0_i32_0 : i32, i32
  }
  func.func @transform_9(%arg0: i32) -> (i32, i32, i32) {
    %c0_i32 = arith.constant 0 : i32
    %c0_i32_0 = arith.constant 0 : i32
    %c0_i32_1 = arith.constant 0 : i32
    return %arg0, %c0_i32, %c0_i32_0 : i32, i32, i32
  }
}

</mosaic_0001>

<bundles_post_ra>
// kernel: tpu_custom_call.1
= control target key start
LH: loop header
LB: loop body
LE: loop exit
PB: predicated region body
PF: predicated region fallthrough
CT: control target
= control target key end

     0   :  { %14 = vsyncpa [#allocation3], 0  ;;  %s3220_s0 = inlined_call_operand.vmem [shape: f32[256,8], index: 0, kind: input, shape index: {}]   ;;  %s3221_s1 = inlined_call_operand.vmem [shape: f32[1,1408], index: 1, kind: input, shape index: {}]   ;;  %s3222_s2 = inlined_call_operand.vmem [shape: f32[8,32], index: 2, kind: input, shape index: {}]   ;;  %s3223_s3 = inlined_call_operand.vmem [shape: bf16[32,64], index: 3, kind: input, shape index: {}]   ;;  %s3224_s4 = inlined_call_operand.vmem [shape: bf16[64,128], index: 4, kind: input, shape index: {}]   ;;  %s3225_s5 = inlined_call_operand.vmem [shape: bf16[256,256], index: 5, kind: input, shape index: {}]   ;;  %s3226_s6 = inlined_call_operand.hbm [shape: bf16[256,256], index: 6, kind: input, shape index: {}]   ;;  %s3227_s7 = inlined_call_operand.hbm [shape: f32[256,128], index: 7, kind: input, shape index: {}]   ;;  %s3228_s8 = inlined_call_operand.vmem [shape: f32[128,64], index: 8, kind: input, shape index: {}]   ;;  %s3229_s9 = inlined_call_operand.vmem [shape: f32[2,1,1], index: 9, kind: output, shape index: {}]  }
   0x1   :  { %15 = vsyncpa [#allocation5], 0  ;;  %s2691_s30 = smov 0  }
   0x2 LB: > { %s2697_s10 = sadd.s32 4294967295, %s2631_s30   ;;  %p2054_p0 = scmp.ge.s32.totalorder %s2631_s30, 1  ;;  %s2631_s30 = sphi %s2691_s30, %s21_s30  }
   0x3   : > { %p246_p1 = scmp.lt.s32.totalorder %s2631_s30, 3  ;;  %s2633_s11 = smov [#allocation2]  }
   0x4   : > { %s273_s12 = sshll.u32 %s2633_s11, 4  ;;  %p3230_p3 = scmp.eq.s32.totalorder %s2697_s10, 0  ;;  %s274_s12 = int_to_ptr.vmem [resolvable:$true] %s273_s12 }
   0x5   : > { %p2701_p2 = pnand %p2054_p0, %p246_p1  ;;  %s2634_s14 = smov [#allocation4]  }
   0x6   : > { %s286_s15 = sshll.u32 %s2634_s14, 4  ;;  %s2561_s19 = scalar_lea.hbm %s3226_s6, 4096  ;;  %s2714_s15 = int_to_ptr.vmem [resolvable:$true] %s286_s15 }
   0x7   : > { %s3232_s13 = scalar_select %p2701_p2, 1, 0 }
   0x8   : > { %p2430_p4 = pneg %p2701_p2  ;;  %p2562_p6 = scmp.ne.s32.totalorder %s3226_s6, %s2561_s19 }
   0x9   : > { %p2568_p10 = scmp.lt.u32.totalorder %s2561_s19, %s3226_s6 }
   0xa   : > { %p2710_p5 = pnand %p3230_p3, %p2430_p4 }
   0xc   : > { %p2563_p7 = pneg %p2710_p5 }
   0xe   : > { %p2564_p8 = pnand %p2563_p7, %p2562_p6 }
  0x10   : > { %p2565_p9 = pneg %p2564_p8 }
  0x12   : > { %p2570_p11 = pnand %p2568_p10, %p2565_p9 }
  0x14   : > { %2573 = shalt.err (!%p2570_p11)
}
  0x15   : > { %s2574_s24 = scalar_lea.vmem %s274_s12, 4096  ;;  %p2582_p1 = scmp.lt.s32.totalorder %s274_s12, %s274_s12 }
  0x16   : > { %p2575_p12 = scmp.ne.s32.totalorder %s274_s12, %s2574_s24  ;;  %p2583_p4 = scmp.lt.s32.totalorder %s2574_s24, %s2574_s24 }
  0x18   : > { %p2577_p13 = pnand %p2575_p12, %p2563_p7  ;;  %p2584_p3 = por %p2583_p4, %p2582_p1 }
  0x1a   : > { %p2578_p0 = pneg %p2577_p13 }
  0x1c   : > { %p2585_p2 = pnand %p2584_p3, %p2578_p0 }
  0x1e   : > { %2588 = shalt.err (!%p2585_p2)
}
  0x1f   : > { %s2635_s25 = smov 128   ;;  %s2636_s26 = smov 8  }
  0x20   : > { %2433 = dma.hbm_to_vmem [thread:$0]  (!%p2710_p5), %s3226_s6, 4096, %s274_s12, [#allocation3], %s2635_s25, %s2635_s25, %s2636_s26  }
  0x21   : > { %s2589_s14 = scalar_lea.hbm %s3227_s7, 4096 }
  0x22   : > { %p2590_p6 = scmp.ne.s32.totalorder %s3227_s7, %s2589_s14  ;;  %p2596_p8 = scmp.lt.u32.totalorder %s2589_s14, %s3227_s7 }
  0x24   : > { %p2592_p2 = pnand %p2590_p6, %p2563_p7 }
  0x26   : > { %p2593_p3 = pneg %p2592_p2 }
  0x28   : > { %p2598_p9 = pnand %p2596_p8, %p2593_p3 }
  0x2a   : > { %2601 = shalt.err (!%p2598_p9)
}
  0x2b   : > { %s2602_s12 = scalar_lea.vmem %s2714_s15, 4096  ;;  %p2610_p13 = scmp.lt.s32.totalorder %s2714_s15, %s2714_s15 }
  0x2c   : > { %p2603_p10 = scmp.ne.s32.totalorder %s2714_s15, %s2602_s12  ;;  %p2611_p0 = scmp.lt.s32.totalorder %s2602_s12, %s2602_s12 }
  0x2e   : > { %p2605_p11 = pnand %p2603_p10, %p2563_p7  ;;  %p2612_p1 = por %p2611_p0, %p2610_p13 }
  0x30   : > { %p2606_p12 = pneg %p2605_p11 }
  0x32   : > { %p2613_p4 = pnand %p2612_p1, %p2606_p12 }
  0x34   : > { %2616 = shalt.err (!%p2613_p4)
}
  0x35   : > { %2436 = dma.hbm_to_vmem [thread:$0]  (!%p2710_p5), %s3227_s7, 4096, %s2714_s15, [#allocation5], %s2635_s25, %s2635_s25, %s2636_s26  }
  0x36   : > { %p3234_p6 = scmp.ne.s32.totalorder %s3232_s13, 0 }
  0x37   : > { %p3235_p2 = scmp.eq.s32.totalorder (!%p3234_p6), %s2697_s10, 0 }
  0x38   : > { %314 = sbr.rel (%p3234_p6) target bundleno = 1901 (0x76d), region = 56 }
  0x3f   : > { %2622 = dma.done.wait (%p3235_p2), [#allocation3], 4096   ;;  %p3236_p7 = pmov %p3235_p2 }
  0x40   : > { %p3237_p3 = pmov %p3235_p2 }
  0x41   : > { %2624 = vsyncadd (%p3236_p7), [#allocation3], 4294963200 }
  0x42   : > { %2626 = dma.done.wait (%p3237_p3), [#allocation5], 4096   ;;  %p3238_p8 = pmov %p3235_p2 }
  0x43   : > { %s2061_s16 = sshll.u32 %s2697_s10, 4  ;;  %vm386_vm0 = vcmask 64512   ;;  %v378_v0 = vld [vmem:[%s3222_s2] sm:$0xff]  ;;  %v2458_v18 = vld [vmem:[%s3223_s3 + $0x8] sm:$0xff]   ;;  %v2461_v21 = vld [vmem:[%s3224_s4 + $0x10] sm:$0xff]   ;;  %vm627_vm1 = vcmask 261120  }
  0x44   : > { %2628 = vsyncadd (%p3238_p8), [#allocation5], 4294963200  ;;  %p353_p9 = scmp.lt.s32.totalorder %s2061_s16, 31  ;;  %2261 = vmatprep.subr.mxu0 %v378_v0  ;;  %v2457_v17 = vld [vmem:[%s3223_s3] sm:$0xff]   ;;  %v2460_v20 = vld [vmem:[%s3224_s4 + $0x8] sm:$0xff]   ;;  %vm812_vm2 = vcmask 523264  }
  0x45   : > { %2262 = vmatpush3.msra.mxu0 %v378_v0  ;;  %2287 = vmatprep.subr.bf16.mxu1 %v2457_v17  ;;  %v2459_v19 = vld [vmem:[%s3224_s4] sm:$0xff]   ;;  %vm2639_vm3 = vmmov 0   ;;  %vm1974_vm4 = vcmask 516096   ;;  %p358_p5 = scmp.lt.s32.totalorder %s2697_s10, 1  ;;  %vm1981_vm5 = vcmask 0  }
  0x46   : > { %s3240_s16 = smov (!%p353_p9, %s2061_s16), 31  ;;  %2288 = vmatpush3.bf16.msra.mxu1 %v2457_v17  ;;  %2307 = vmatprep.subr.bf16.mxu0 %v2459_v19  ;;  %v2063_v22 = vld [vmem:[%s3221_s1] ss:$0 sm:$0xff]  ;;  %v2849_v17 = vld [vmem:[%s3221_s1 + $0x1] ss:$0 sm:$0xff] }
  0x47   : > { %s2062_s15 = sshll.u32 %s3240_s16, 3  ;;  %2289 = vmatprep.subr.bf16.mxu1 %v2458_v18  ;;  %s3242_s10 = smov (!%p358_p5, %s2697_s10), 1 }
  0x48   : > { %s2777_s24 = scalar_lea.vmem %s3220_s0, %s2062_s15  ;;  %s360_s13 = scalar_lea.vmem %s3229_s9, %s3242_s10 }
  0x49   : > { %v362_v1 = vld [vmem:[%s2777_s24] sm:$0xff]  ;;  %v363_v2 = vld [vmem:[%s2777_s24 + $0x8] sm:$0xff]  ;;  %v364_v3 = vld [vmem:[%s2777_s24 + $0x10] sm:$0xff] }
  0x4a   : > { %2263 = vmatprep.mubr.msk.f32.mxu0 %vm386_vm0, %v362_v1  ;;  %v365_v4 = vld [vmem:[%s2777_s24 + $0x18] sm:$0xff]  ;;  %v366_v5 = vld [vmem:[%s2777_s24 + $0x20] sm:$0xff]  ;;  %v367_v6 = vld [vmem:[%s2777_s24 + $0x28] sm:$0xff]  ;;  %2290 = vmatpush3.bf16.msra.mxu1 %v2458_v18 }
  0x4b   : > { %2264 = vmatmul.mubr.msk.f32.vlgmr.msra.gmra.mrb[0].mxu0 %vm386_vm0, %v363_v2  ;;  %v368_v7 = vld [vmem:[%s2777_s24 + $0x30] sm:$0xff]  ;;  %v369_v8 = vld [vmem:[%s2777_s24 + $0x38] sm:$0xff]  ;;  %v370_v9 = vld [vmem:[%s2777_s24 + $0x40] sm:$0xff] }
  0x4c   : > { %2266 = vmatprep.mubr.msk.f32.mxu0 %vm386_vm0, %v364_v3  ;;  %v371_v10 = vld [vmem:[%s2777_s24 + $0x48] sm:$0xff]  ;;  %v372_v11 = vld [vmem:[%s2777_s24 + $0x50] sm:$0xff]  ;;  %v373_v12 = vld [vmem:[%s2777_s24 + $0x58] sm:$0xff]  ;;  %2308 = vmatpush3.bf16.msra.mxu0 %v2459_v19 }
  0x4d   : > { %v374_v13 = vld [vmem:[%s2777_s24 + $0x60] sm:$0xff]  ;;  %v375_v14 = vld [vmem:[%s2777_s24 + $0x68] sm:$0xff]  ;;  %v376_v15 = vld [vmem:[%s2777_s24 + $0x70] sm:$0xff]  ;;  %2309 = vmatprep.subr.bf16.mxu0 %v2460_v20 }
  0x4e   : > { %v377_v16 = vld [vmem:[%s2777_s24 + $0x78] sm:$0xff] }
  0x4f   : > { %2267 = vmatmul.mubr.msk.f32.gmra.mrb[2].mxu0 %vm386_vm0, %v365_v4 }
  0x50   : > { %2269 = vmatprep.mubr.msk.f32.mxu0 %vm386_vm0, %v366_v5  ;;  %2310 = vmatpush3.bf16.msra.mxu0 %v2460_v20 }
  0x51   : > { %2311 = vmatprep.subr.bf16.mxu0 %v2461_v21 }
  0x53   : > { %2270 = vmatmul.mubr.msk.f32.gmra.mrb[4].mxu0 %vm386_vm0, %v367_v6 }
  0x54   : > { %2272 = vmatprep.mubr.msk.f32.mxu0 %vm386_vm0, %v368_v7  ;;  %2312 = vmatpush3.bf16.msra.mxu0 %v2461_v21 }
  0x57   : > { %2273 = vmatmul.mubr.msk.f32.gmra.mrb[6].mxu0 %vm386_vm0, %v369_v8 }
  0x58   : > { %2275 = vmatprep.mubr.msk.f32.mxu0 %vm386_vm0, %v370_v9 }
  0x5b   : > { %2276 = vmatmul.mubr.msk.f32.gmra.mrb[8].mxu0 %vm386_vm0, %v371_v10 }
  0x5c   : > { %2278 = vmatprep.mubr.msk.f32.mxu0 %vm386_vm0, %v372_v11 }
  0x5f   : > { %2279 = vmatmul.mubr.msk.f32.gmra.mrb[10].mxu0 %vm386_vm0, %v373_v12 }
  0x60   : > { %2281 = vmatprep.mubr.msk.f32.mxu0 %vm386_vm0, %v374_v13 }
  0x63   : > { %2282 = vmatmul.mubr.msk.f32.gmra.mrb[12].mxu0 %vm386_vm0, %v375_v14 }
  0x64   : > { %2284 = vmatprep.mubr.msk.f32.mxu0 %vm386_vm0, %v376_v15  ;;  %v2462_v15 = vld [vmem:[%s3224_s4 + $0x18] sm:$0xff]  }
  0x65   : > { %2313 = vmatprep.subr.bf16.mxu0 %v2462_v15 }
  0x66   : > { %2314 = vmatpush3.bf16.msra.mxu0 %v2462_v15 }
  0x67   : > { %2285 = vmatmul.mubr.msk.f32.gmra.mrb[14].mxu0 %vm386_vm0, %v377_v16  ;;  %v2465_v16 = vld [vmem:[%s3225_s5 + $0x4] ss:$8 sps:$4 sm:$0xff]  }
  0x68   : > { %1228 = vmatprep.subr.bf16.mxu0 %v2465_v16 }
 0x11e   : > { %v2265_v23 = vpop.f32.mrb[0].mxu0 }
 0x11f   : > { %v507_v24 = vadd.f32 %v2265_v23, %v2063_v22  ;;  %v501_v25 = vpop.f32.mrb[1].mxu0 }
 0x120   : > { %v502_v26 = vadd.f32 %v2063_v22, %v501_v25 }
 0x121   : > { %v581_v27 = vmax.f32 %v507_v24, 0.0 }
 0x122   : > { %v580_v28 = vmax.f32 %v502_v26, 0.0  ;;  %v2268_v29 = vpop.f32.mrb[2].mxu0 }
 0x123   : > { %v517_v30 = vadd.f32 %v2268_v29, %v2063_v22  ;;  %v511_v31 = vpop.f32.mrb[3].mxu0 }
 0x124   : > { %v512_v32 = vadd.f32 %v2063_v22, %v511_v31  ;;  %v596_v33 = vpack.c.bf16 %v581_v27, %v580_v28 }
 0x125   : > { %v583_v34 = vmax.f32 %v517_v30, 0.0 }
 0x126   : > { %v582_v35 = vmax.f32 %v512_v32, 0.0  ;;  %v2271_v36 = vpop.f32.mrb[4].mxu0  ;;  %2291 = vmatprep.mubr.msk.bf16.mxu1 %vm627_vm1, %v596_v33  ;;  %v2463_v33 = vld [vmem:[%s3225_s5] ss:$8 sps:$4 sm:$0xff]  }
 0x127   : > { %v527_v37 = vadd.f32 %v2271_v36, %v2063_v22  ;;  %v521_v38 = vpop.f32.mrb[5].mxu0  ;;  %v2468_v36 = vld [vmem:[%s3225_s5 + $0x14] ss:$8 sps:$4 sm:$0xff]  }
 0x128   : > { %v597_v39 = vpack.c.bf16 %v583_v34, %v582_v35  ;;  %v522_v40 = vadd.f32 %v2063_v22, %v521_v38 }
 0x129   : > { %v585_v41 = vmax.f32 %v527_v37, 0.0 }
 0x12a   : > { %v584_v42 = vmax.f32 %v522_v40, 0.0  ;;  %v2274_v43 = vpop.f32.mrb[6].mxu0  ;;  %2292 = vmatmul.mubr.msk.bf16.vlgmr.msra.gmra.mrb[0].mxu1 %vm627_vm1, %v597_v39 }
 0x12b   : > { %v537_v44 = vadd.f32 %v2274_v43, %v2063_v22  ;;  %v531_v45 = vpop.f32.mrb[7].mxu0 }
 0x12c   : > { %v598_v46 = vpack.c.bf16 %v585_v41, %v584_v42  ;;  %v532_v47 = vadd.f32 %v2063_v22, %v531_v45  ;;  %v2466_v42 = vld [vmem:[%s3225_s5 + $0x10] ss:$8 sps:$4 sm:$0xff]   ;;  %v2471_v45 = vld [vmem:[%s3225_s5 + $0x24] ss:$8 sps:$4 sm:$0xff]  }
 0x12d   : > { %v587_v48 = vmax.f32 %v537_v44, 0.0 }
 0x12e   : > { %v586_v49 = vmax.f32 %v532_v47, 0.0  ;;  %v2277_v50 = vpop.f32.mrb[8].mxu0  ;;  %2295 = vmatprep.mubr.msk.bf16.mxu1 %vm627_vm1, %v598_v46 }
 0x12f   : > { %v547_v51 = vadd.f32 %v2277_v50, %v2063_v22  ;;  %v541_v52 = vpop.f32.mrb[9].mxu0 }
 0x130   : > { %v599_v53 = vpack.c.bf16 %v587_v48, %v586_v49  ;;  %v542_v54 = vadd.f32 %v2063_v22, %v541_v52 }
 0x131   : > { %v589_v55 = vmax.f32 %v547_v51, 0.0  ;;  %v2469_v51 = vld [vmem:[%s3225_s5 + $0x20] ss:$8 sps:$4 sm:$0xff]  }
 0x132   : > { %v588_v56 = vmax.f32 %v542_v54, 0.0  ;;  %v2280_v57 = vpop.f32.mrb[10].mxu0  ;;  %2296 = vmatmul.mubr.msk.bf16.gmra.mrb[4].mxu1 %vm627_vm1, %v599_v53  ;;  %v2474_v54 = vld [vmem:[%s3225_s5 + $0x34] ss:$8 sps:$4 sm:$0xff]  }
 0x133   : > { %v557_v58 = vadd.f32 %v2280_v57, %v2063_v22  ;;  %v551_v59 = vpop.f32.mrb[11].mxu0 }
 0x134   : > { %v600_v60 = vpack.c.bf16 %v589_v55, %v588_v56  ;;  %v552_v61 = vadd.f32 %v2063_v22, %v551_v59 }
 0x135   : > { %v591_v62 = vmax.f32 %v557_v58, 0.0 }
 0x136   : > { %v590_v63 = vmax.f32 %v552_v61, 0.0  ;;  %v2283_v0 = vpop.f32.mrb[12].mxu0  ;;  %2299 = vmatprep.mubr.msk.bf16.mxu1 %vm627_vm1, %v600_v60  ;;  %v2472_v60 = vld [vmem:[%s3225_s5 + $0x30] ss:$8 sps:$4 sm:$0xff]  }
 0x137   : > { %v567_v1 = vadd.f32 %v2283_v0, %v2063_v22  ;;  %v561_v2 = vpop.f32.mrb[13].mxu0 }
 0x138   : > { %v601_v3 = vpack.c.bf16 %v591_v62, %v590_v63  ;;  %v562_v4 = vadd.f32 %v2063_v22, %v561_v2  ;;  %v2477_v63 = vld [vmem:[%s3225_s5 + $0x44] ss:$8 sps:$4 sm:$0xff]  }
 0x139   : > { %v593_v5 = vmax.f32 %v567_v1, 0.0 }
 0x13a   : > { %v592_v6 = vmax.f32 %v562_v4, 0.0  ;;  %v2286_v7 = vpop.f32.mrb[14].mxu0  ;;  %2300 = vmatmul.mubr.msk.bf16.gmra.mrb[8].mxu1 %vm627_vm1, %v601_v3 }
 0x13b   : > { %v577_v8 = vadd.f32 %v2286_v7, %v2063_v22  ;;  %v571_v9 = vpop.f32.mrb[15].mxu0 }
 0x13c   : > { %v602_v10 = vpack.c.bf16 %v593_v5, %v592_v6  ;;  %v572_v11 = vadd.f32 %v2063_v22, %v571_v9  ;;  %v2475_v5 = vld [vmem:[%s3225_s5 + $0x40] ss:$8 sps:$4 sm:$0xff]  }
 0x13d   : > { %v595_v12 = vmax.f32 %v577_v8, 0.0  ;;  %v2480_v8 = vld [vmem:[%s3225_s5 + $0x54] ss:$8 sps:$4 sm:$0xff]  }
 0x13e   : > { %v594_v13 = vmax.f32 %v572_v11, 0.0  ;;  %2303 = vmatprep.mubr.msk.bf16.mxu1 %vm627_vm1, %v602_v10 }
 0x140   : > { %v603_v14 = vpack.c.bf16 %v595_v12, %v594_v13 }
 0x142   : > { %2304 = vmatmul.mubr.msk.bf16.gmra.mrb[12].mxu1 %vm627_vm1, %v603_v14  ;;  %v2478_v14 = vld [vmem:[%s3225_s5 + $0x50] ss:$8 sps:$4 sm:$0xff]  }
 0x1fd   : > { %v2293_v18 = vpop.f32.mrb[0].mxu1 }
 0x1fe   : > { %v695_v19 = vadd.f32 %v2293_v18, %v2849_v17  ;;  %v686_v20 = vpop.f32.mrb[1].mxu1 }
 0x1ff   : > { %v687_v21 = vadd.f32 %v2849_v17, %v686_v20  ;;  %v2294_v22 = vpop.f32.mrb[2].mxu1 }
 0x200   : > { %v698_v23 = vadd.f32 %v2294_v22, %v2849_v17  ;;  %v689_v24 = vpop.f32.mrb[3].mxu1  ;;  %v751_v26 = vmax.f32 %v695_v19, 0.0  ;;  %v2481_v22 = vld [vmem:[%s3225_s5 + $0x60] ss:$8 sps:$4 sm:$0xff]  }
 0x201   : > { %v690_v25 = vadd.f32 %v2849_v17, %v689_v24  ;;  %v749_v28 = vmax.f32 %v687_v21, 0.0  ;;  %v2484_v24 = vld [vmem:[%s3225_s5 + $0x70] ss:$8 sps:$4 sm:$0xff]  }
 0x202   : > { %v752_v27 = vmax.f32 %v698_v23, 0.0  ;;  %v2486_v23 = vld [vmem:[%s3225_s5 + $0x74] ss:$8 sps:$4 sm:$0xff]  }
 0x203   : > { %v750_v29 = vmax.f32 %v690_v25, 0.0  ;;  %v2637_v25 = vmov 0  }
 0x204   : > { %v766_v30 = vpack.c.bf16 %v752_v27, %v751_v26  ;;  %1131 = vmatprep.mubr.bf16.mxu1 %v2637_v25  ;;  %v2489_v26 = vld [vmem:[%s3225_s5 + $0x84] ss:$8 sps:$4 sm:$0xff]   ;;  %v2487_v27 = vld [vmem:[%s3225_s5 + $0x80] ss:$8 sps:$4 sm:$0xff]  }
 0x205   : > { %v765_v31 = vpack.c.bf16 %v750_v29, %v749_v28  ;;  %v2297_v32 = vpop.f32.mrb[4].mxu1  ;;  %1099 = vmatprep.subr.bf16.mxu1 %v2489_v26  ;;  %v2492_v28 = vld [vmem:[%s3225_s5 + $0x94] ss:$8 sps:$4 sm:$0xff]   ;;  %v2490_v29 = vld [vmem:[%s3225_s5 + $0x90] ss:$8 sps:$4 sm:$0xff]  }
 0x206   : > { %v711_v34 = vadd.f32 %v2297_v32, %v2849_v17  ;;  %v702_v35 = vpop.f32.mrb[5].mxu1  ;;  %1100 = vmatpush1.bf16.msra.mxu1 %v2487_v27  ;;  %v2498_v32 = vld [vmem:[%s3225_s5 + $0xb4] ss:$8 sps:$4 sm:$0xff]  }
 0x207   : > { %v703_v37 = vadd.f32 %v2849_v17, %v702_v35  ;;  %v2298_v38 = vpop.f32.mrb[6].mxu1  ;;  %2315 = vmatprep.mubr.msk.bf16.mxu0 %vm812_vm2, %v765_v31  ;;  %1101 = vmatprep.subr.bf16.mxu1 %v2492_v28  ;;  %v2493_v31 = vld [vmem:[%s3225_s5 + $0xa0] ss:$8 sps:$4 sm:$0xff]  }
 0x208   : > { %v714_v39 = vadd.f32 %v2298_v38, %v2849_v17  ;;  %v705_v40 = vpop.f32.mrb[7].mxu1  ;;  %2316 = vmatmul.mubr.msk.bf16.vlgmr.msra.gmra.mrb[16].mxu0 %vm812_vm2, %v766_v30  ;;  %v755_v43 = vmax.f32 %v711_v34, 0.0  ;;  %v2495_v30 = vld [vmem:[%s3225_s5 + $0xa4] ss:$8 sps:$4 sm:$0xff]   ;;  %v2499_v35 = vld [vmem:[%s3225_s5 + $0xc0] ss:$8 sps:$4 sm:$0xff]  }
 0x209   : > { %v706_v41 = vadd.f32 %v2849_v17, %v705_v40  ;;  %1229 = vmatpush1.bf16.msra.mxu0 %v2463_v33  ;;  %v753_v46 = vmax.f32 %v703_v37, 0.0  ;;  %v2496_v33 = vld [vmem:[%s3225_s5 + $0xb0] ss:$8 sps:$4 sm:$0xff]   ;;  %v2501_v34 = vld [vmem:[%s3225_s5 + $0xc4] ss:$8 sps:$4 sm:$0xff]  }
 0x20a   : > { %v756_v44 = vmax.f32 %v714_v39, 0.0  ;;  %1230 = vmatprep.subr.bf16.mxu0 %v2468_v36  ;;  %1102 = vmatpush1.bf16.msra.mxu1 %v2490_v29  ;;  %v2504_v36 = vld [vmem:[%s3225_s5 + $0xd4] ss:$8 sps:$4 sm:$0xff]   ;;  %v2502_v37 = vld [vmem:[%s3225_s5 + $0xd0] ss:$8 sps:$4 sm:$0xff]  }
 0x20b   : > { %v754_v47 = vmax.f32 %v706_v41, 0.0  ;;  %1103 = vmatprep.subr.bf16.mxu1 %v2495_v30  ;;  %v2507_v38 = vld [vmem:[%s3225_s5 + $0xe4] ss:$8 sps:$4 sm:$0xff]   ;;  %v2505_v39 = vld [vmem:[%s3225_s5 + $0xe0] ss:$8 sps:$4 sm:$0xff]  }
 0x20c   : > { %v768_v48 = vpack.c.bf16 %v756_v44, %v755_v43  ;;  %v2510_v40 = vld [vmem:[%s3225_s5 + $0xf4] ss:$8 sps:$4 sm:$0xff]   ;;  %v2508_v41 = vld [vmem:[%s3225_s5 + $0xf0] ss:$8 sps:$4 sm:$0xff]   ;;  %v2091_v43 = vld [vmem:[%s3221_s1 + $0x2] ss:$0 sm:$0xff] }
 0x20d   : > { %v767_v49 = vpack.c.bf16 %v754_v47, %v753_v46  ;;  %v2301_v50 = vpop.f32.mrb[8].mxu1  ;;  %1231 = vmatpush1.bf16.msra.mxu0 %v2466_v42  ;;  %v2513_v42 = vld [vmem:[#allocation2 + $0x4] ss:$8 sps:$4 sm:$0xff]  }
 0x20e   : > { %v727_v52 = vadd.f32 %v2301_v50, %v2849_v17  ;;  %v718_v53 = vpop.f32.mrb[9].mxu1  ;;  %1232 = vmatprep.subr.bf16.mxu0 %v2471_v45  ;;  %1104 = vmatpush1.bf16.msra.mxu1 %v2493_v31 }
 0x20f   : > { %v719_v55 = vadd.f32 %v2849_v17, %v718_v53  ;;  %v2302_v56 = vpop.f32.mrb[10].mxu1  ;;  %2319 = vmatprep.mubr.msk.bf16.mxu0 %vm812_vm2, %v767_v49  ;;  %1105 = vmatprep.subr.bf16.mxu1 %v2498_v32 }
 0x210   : > { %v730_v57 = vadd.f32 %v2302_v56, %v2849_v17  ;;  %v721_v58 = vpop.f32.mrb[11].mxu1  ;;  %2320 = vmatmul.mubr.msk.bf16.gmra.mrb[20].mxu0 %vm812_vm2, %v768_v48  ;;  %v759_v61 = vmax.f32 %v727_v52, 0.0 }
 0x211   : > { %v722_v59 = vadd.f32 %v2849_v17, %v721_v58  ;;  %1233 = vmatpush1.bf16.msra.mxu0 %v2469_v51  ;;  %v757_v0 = vmax.f32 %v719_v55, 0.0 }
 0x212   : > { %v760_v62 = vmax.f32 %v730_v57, 0.0  ;;  %1234 = vmatprep.subr.bf16.mxu0 %v2474_v54  ;;  %1106 = vmatpush1.bf16.msra.mxu1 %v2496_v33 }
 0x213   : > { %v758_v1 = vmax.f32 %v722_v59, 0.0  ;;  %1107 = vmatprep.subr.bf16.mxu1 %v2501_v34 }
 0x214   : > { %v770_v2 = vpack.c.bf16 %v760_v62, %v759_v61 }
 0x215   : > { %v769_v3 = vpack.c.bf16 %v758_v1, %v757_v0  ;;  %v2305_v4 = vpop.f32.mrb[12].mxu1  ;;  %1235 = vmatpush1.bf16.msra.mxu0 %v2472_v60 }
 0x216   : > { %v743_v6 = vadd.f32 %v2305_v4, %v2849_v17  ;;  %v734_v7 = vpop.f32.mrb[13].mxu1  ;;  %1236 = vmatprep.subr.bf16.mxu0 %v2477_v63  ;;  %1108 = vmatpush1.bf16.msra.mxu1 %v2499_v35 }
 0x217   : > { %v735_v9 = vadd.f32 %v2849_v17, %v734_v7  ;;  %v2306_v10 = vpop.f32.mrb[14].mxu1  ;;  %2323 = vmatprep.mubr.msk.bf16.mxu0 %vm812_vm2, %v769_v3  ;;  %1109 = vmatprep.subr.bf16.mxu1 %v2504_v36 }
 0x218   : > { %v746_v11 = vadd.f32 %v2306_v10, %v2849_v17  ;;  %v737_v12 = vpop.f32.mrb[15].mxu1  ;;  %2324 = vmatmul.mubr.msk.bf16.gmra.mrb[24].mxu0 %vm812_vm2, %v770_v2  ;;  %v763_v15 = vmax.f32 %v743_v6, 0.0 }
 0x219   : > { %v738_v13 = vadd.f32 %v2849_v17, %v737_v12  ;;  %1237 = vmatpush1.bf16.msra.mxu0 %v2475_v5  ;;  %v761_v18 = vmax.f32 %v735_v9, 0.0  ;;  %v2483_v17 = vld [vmem:[%s3225_s5 + $0x64] ss:$8 sps:$4 sm:$0xff]  }
 0x21a   : > { %v764_v16 = vmax.f32 %v746_v11, 0.0  ;;  %1238 = vmatprep.subr.bf16.mxu0 %v2480_v8  ;;  %1110 = vmatpush1.bf16.msra.mxu1 %v2502_v37 }
 0x21b   : > { %v762_v19 = vmax.f32 %v738_v13, 0.0  ;;  %1111 = vmatprep.subr.bf16.mxu1 %v2507_v38 }
 0x21c   : > { %v772_v20 = vpack.c.bf16 %v764_v16, %v763_v15 }
 0x21d   : > { %v771_v21 = vpack.c.bf16 %v762_v19, %v761_v18  ;;  %1239 = vmatpush1.bf16.msra.mxu0 %v2478_v14 }
 0x21e   : > { %1240 = vmatprep.subr.bf16.mxu0 %v2483_v17  ;;  %1112 = vmatpush1.bf16.msra.mxu1 %v2505_v39 }
 0x21f   : > { %2327 = vmatprep.mubr.msk.bf16.mxu0 %vm812_vm2, %v771_v21  ;;  %1113 = vmatprep.subr.bf16.mxu1 %v2510_v40 }
 0x220   : > { %2328 = vmatmul.mubr.msk.bf16.gmra.mrb[28].mxu0 %vm812_vm2, %v772_v20 }
 0x221   : > { %1241 = vmatpush1.bf16.msra.mxu0 %v2481_v22  ;;  %1260 = vmatprep.mubr.bf16.mxu0 %v2637_v25 }
 0x222   : > { %1242 = vmatprep.subr.bf16.mxu0 %v2486_v23  ;;  %1114 = vmatpush1.bf16.msra.mxu1 %v2508_v41 }
 0x223   : > { %1593 = vmatprep.subr.bf16.mxu1 %v2513_v42 }
 0x225   : > { %1243 = vmatpush1.bf16.msra.mxu0 %v2484_v24 }
 0x2db   : > { %v2317_v44 = vpop.f32.mrb[16].mxu0 }
 0x2dc   : > { %v880_v45 = vadd.f32 %v2317_v44, %v2091_v43  ;;  %v871_v46 = vpop.f32.mrb[17].mxu0 }
 0x2dd   : > { %v872_v47 = vadd.f32 %v2091_v43, %v871_v46  ;;  %v2318_v48 = vpop.f32.mrb[18].mxu0 }
 0x2de   : > { %v883_v49 = vadd.f32 %v2318_v48, %v2091_v43  ;;  %v874_v50 = vpop.f32.mrb[19].mxu0  ;;  %v936_v52 = vmax.f32 %v880_v45, 0.0 }
 0x2df   : > { %v875_v51 = vadd.f32 %v2091_v43, %v874_v50  ;;  %v934_v54 = vmax.f32 %v872_v47, 0.0 }
 0x2e0   : > { %v937_v53 = vmax.f32 %v883_v49, 0.0 }
 0x2e1   : > { %v935_v55 = vmax.f32 %v875_v51, 0.0 }
 0x2e2   : > { %v951_v56 = vpack.c.bf16 %v937_v53, %v936_v52  ;;  %v2511_v53 = vld [vmem:[#allocation2] ss:$8 sps:$4 sm:$0xff]  }
 0x2e3   : > { %v950_v57 = vpack.c.bf16 %v935_v55, %v934_v54  ;;  %v2321_v58 = vpop.f32.mrb[20].mxu0  ;;  %v2516_v55 = vld [vmem:[#allocation2 + $0x14] ss:$8 sps:$4 sm:$0xff]  }
 0x2e4   : > { %v896_v59 = vadd.f32 %v2321_v58, %v2091_v43  ;;  %v887_v60 = vpop.f32.mrb[21].mxu0  ;;  %v2519_v58 = vld [vmem:[#allocation2 + $0x24] ss:$8 sps:$4 sm:$0xff]  }
 0x2e5   : > { %v888_v61 = vadd.f32 %v2091_v43, %v887_v60  ;;  %v2322_v62 = vpop.f32.mrb[22].mxu0  ;;  %1261 = vmatmul.mubr.bf16.vlgmr.msra.gmra.mrb[32].mxu0 %v950_v57  ;;  %v2520_v60 = vld [vmem:[#allocation2 + $0x30] ss:$8 sps:$4 sm:$0xff]  }
 0x2e6   : > { %v899_v63 = vadd.f32 %v2322_v62, %v2091_v43  ;;  %v890_v0 = vpop.f32.mrb[23].mxu0  ;;  %1270 = vmatprep.mubr.bf16.mxu0 %v2637_v25  ;;  %v940_v2 = vmax.f32 %v896_v59, 0.0  ;;  %v2522_v59 = vld [vmem:[#allocation2 + $0x34] ss:$8 sps:$4 sm:$0xff]   ;;  %v2525_v62 = vld [vmem:[#allocation2 + $0x44] ss:$8 sps:$4 sm:$0xff]  }
 0x2e7   : > { %v891_v1 = vadd.f32 %v2091_v43, %v890_v0  ;;  %v938_v4 = vmax.f32 %v888_v61, 0.0  ;;  %v2523_v61 = vld [vmem:[#allocation2 + $0x40] ss:$8 sps:$4 sm:$0xff]  }
 0x2e8   : > { %v941_v3 = vmax.f32 %v899_v63, 0.0  ;;  %v2528_v63 = vld [vmem:[#allocation2 + $0x54] ss:$8 sps:$4 sm:$0xff]   ;;  %v2529_v0 = vld [vmem:[#allocation2 + $0x60] ss:$8 sps:$4 sm:$0xff]  }
 0x2e9   : > { %v939_v5 = vmax.f32 %v891_v1, 0.0  ;;  %v2531_v1 = vld [vmem:[#allocation2 + $0x64] ss:$8 sps:$4 sm:$0xff]  }
 0x2ea   : > { %v953_v6 = vpack.c.bf16 %v941_v3, %v940_v2  ;;  %v2534_v2 = vld [vmem:[#allocation2 + $0x74] ss:$8 sps:$4 sm:$0xff]   ;;  %v2532_v3 = vld [vmem:[#allocation2 + $0x70] ss:$8 sps:$4 sm:$0xff]  }
 0x2eb   : > { %v952_v7 = vpack.c.bf16 %v939_v5, %v938_v4  ;;  %v2325_v8 = vpop.f32.mrb[24].mxu0  ;;  %v2535_v4 = vld [vmem:[#allocation2 + $0x80] ss:$8 sps:$4 sm:$0xff]   ;;  %v2537_v5 = vld [vmem:[#allocation2 + $0x84] ss:$8 sps:$4 sm:$0xff]  }
 0x2ec   : > { %v912_v9 = vadd.f32 %v2325_v8, %v2091_v43  ;;  %v903_v10 = vpop.f32.mrb[25].mxu0  ;;  %v2541_v8 = vld [vmem:[#allocation2 + $0xa0] ss:$8 sps:$4 sm:$0xff]  }
 0x2ed   : > { %v904_v11 = vadd.f32 %v2091_v43, %v903_v10  ;;  %v2326_v12 = vpop.f32.mrb[26].mxu0  ;;  %1271 = vmatmul.mubr.bf16.gmra.mrb[36].mxu0 %v951_v56  ;;  %v2546_v10 = vld [vmem:[#allocation2 + $0xb4] ss:$8 sps:$4 sm:$0xff]  }
 0x2ee   : > { %v915_v13 = vadd.f32 %v2326_v12, %v2091_v43  ;;  %v906_v14 = vpop.f32.mrb[27].mxu0  ;;  %1280 = vmatprep.mubr.bf16.mxu0 %v2637_v25  ;;  %v944_v16 = vmax.f32 %v912_v9, 0.0  ;;  %v2543_v9 = vld [vmem:[#allocation2 + $0xa4] ss:$8 sps:$4 sm:$0xff]   ;;  %v2547_v12 = vld [vmem:[#allocation2 + $0xc0] ss:$8 sps:$4 sm:$0xff]  }
 0x2ef   : > { %v907_v15 = vadd.f32 %v2091_v43, %v906_v14  ;;  %v942_v19 = vmax.f32 %v904_v11, 0.0  ;;  %v2544_v11 = vld [vmem:[#allocation2 + $0xb0] ss:$8 sps:$4 sm:$0xff]   ;;  %v2552_v14 = vld [vmem:[#allocation2 + $0xd4] ss:$8 sps:$4 sm:$0xff]  }
 0x2f0   : > { %v945_v18 = vmax.f32 %v915_v13, 0.0  ;;  %v2549_v13 = vld [vmem:[#allocation2 + $0xc4] ss:$8 sps:$4 sm:$0xff]  }
 0x2f1   : > { %v943_v20 = vmax.f32 %v907_v15, 0.0  ;;  %v2550_v15 = vld [vmem:[#allocation2 + $0xd0] ss:$8 sps:$4 sm:$0xff]  }
 0x2f2   : > { %v955_v21 = vpack.c.bf16 %v945_v18, %v944_v16  ;;  %v2555_v16 = vld [vmem:[#allocation2 + $0xe4] ss:$8 sps:$4 sm:$0xff]   ;;  %v2553_v18 = vld [vmem:[#allocation2 + $0xe0] ss:$8 sps:$4 sm:$0xff]  }
 0x2f3   : > { %v954_v17 = vpack.c.bf16 %v943_v20, %v942_v19  ;;  %v2329_v22 = vpop.f32.mrb[28].mxu0  ;;  %v2558_v19 = vld [vmem:[#allocation2 + $0xf4] ss:$8 sps:$4 sm:$0xff]   ;;  %v2556_v20 = vld [vmem:[#allocation2 + $0xf0] ss:$8 sps:$4 sm:$0xff]  }
 0x2f4   : > { %v959_v23 = vmax.bf16 %v955_v21, %v951_v56  ;;  %v928_v24 = vadd.f32 %v2329_v22, %v2091_v43  ;;  %v919_v26 = vpop.f32.mrb[29].mxu0  ;;  %v2514_v56 = vld [vmem:[#allocation2 + $0x10] ss:$8 sps:$4 sm:$0xff]  }
 0x2f5   : > { %v958_v27 = vmax.bf16 %v954_v17, %v950_v57  ;;  %v920_v28 = vadd.f32 %v2091_v43, %v919_v26  ;;  %v2330_v29 = vpop.f32.mrb[30].mxu0  ;;  %1281 = vmatmul.mubr.bf16.gmra.mrb[40].mxu0 %v952_v7  ;;  %v2517_v57 = vld [vmem:[#allocation2 + $0x20] ss:$8 sps:$4 sm:$0xff]  }
 0x2f6   : > { %v931_v30 = vadd.f32 %v2330_v29, %v2091_v43  ;;  %v922_v31 = vpop.f32.mrb[31].mxu0  ;;  %1290 = vmatprep.mubr.bf16.mxu0 %v2637_v25  ;;  %v948_v33 = vmax.f32 %v928_v24, 0.0 }
 0x2f7   : > { %v923_v32 = vadd.f32 %v2091_v43, %v922_v31  ;;  %v946_v35 = vmax.f32 %v920_v28, 0.0 }
 0x2f8   : > { %v949_v34 = vmax.f32 %v931_v30, 0.0 }
 0x2f9   : > { %v947_v36 = vmax.f32 %v923_v32, 0.0 }
 0x2fa   : > { %v957_v37 = vpack.c.bf16 %v949_v34, %v948_v33 }
 0x2fb   : > { %v956_v38 = vpack.c.bf16 %v947_v36, %v946_v35 }
 0x2fc   : > { %v961_v39 = vmax.bf16 %v957_v37, %v953_v6 }
 0x2fd   : > { %v960_v40 = vmax.bf16 %v956_v38, %v952_v7  ;;  %1291 = vmatmul.mubr.bf16.gmra.mrb[44].mxu0 %v953_v6  ;;  %v2540_v6 = vld [vmem:[#allocation2 + $0x94] ss:$8 sps:$4 sm:$0xff]   ;;  %v2538_v7 = vld [vmem:[#allocation2 + $0x90] ss:$8 sps:$4 sm:$0xff]  }
 0x2fe   : > { %v963_v41 = vmax.bf16 %v961_v39, %v959_v23  ;;  %1300 = vmatprep.mubr.bf16.mxu0 %v2637_v25  ;;  %v1089_v39 = vlaneseq }
 0x2ff   : > { %v962_v42 = vmax.bf16 %v960_v40, %v958_v27 }
 0x301   : > { %v964_v44 = vmax.bf16 %v963_v41, %v962_v42  ;;  %v3008_v42 = vshrl.u32 %v1089_v39, 7 }
 0x303   : > { %v965_v45 = vunpack.c.l.bf16 %v964_v44  ;;  %v966_v46 = vunpack.c.h.bf16 %v964_v44 }
 0x305   : > { %v967_v47 = vmax.f32 %v965_v45, %v966_v46  ;;  %1301 = vmatmul.mubr.bf16.gmra.mrb[48].mxu0 %v954_v17  ;;  %v3015_v46 = vsub.s32 0, %v3008_v42 }
 0x306   : > { %1310 = vmatprep.mubr.bf16.mxu0 %v2637_v25 }
 0x307   : > { %v968_v43 = vrot.slane %v967_v47, 4 }
 0x309   : > { %v969_v48 = vmax.f32 %v967_v47, %v968_v43  ;;  %v1007_v43 = vld [vmem:[%s3221_s1 + $0x3] sm:$0x3] }
 0x30b   : > { %v970_v49 = vrot.slane %v969_v48, 2 }
 0x30d   : > { %1311 = vmatmul.mubr.bf16.gmra.mrb[52].mxu0 %v955_v21  ;;  %v971_v50 = vmax.f32 %v969_v48, %v970_v49  ;;  %v1095_v48 = vsub.s32 1, %v3008_v42 }
 0x30e   : > { %1320 = vmatprep.mubr.bf16.mxu0 %v2637_v25 }
 0x30f   : > { %v972_v51 = vrot.slane %v971_v50, 1 }
 0x311   : > { %v973_v52 = vmax.f32 %v971_v50, %v972_v51  ;;  %v1092_v50 = vrot.slane %v1007_v43, %v3015_v46  ;;  %v1096_v51 = vrot.slane %v1007_v43, %v1095_v48 }
 0x313   : > { %v974_v54 = vpack.c.bf16 %v973_v52, %v973_v52 }
 0x315   : > { %1132 = vmatmul.mubr.bf16.vlgmr.msra.gmra.mrb[16].mxu1 %v974_v54  ;;  %1321 = vmatmul.mubr.bf16.gmra.mrb[56].mxu0 %v956_v38 }
 0x316   : > { %1330 = vmatprep.mubr.bf16.mxu0 %v2637_v25  ;;  %1594 = vmatpush1.bf16.msra.mxu1 %v2511_v53  ;;  %v2526_v25 = vld [vmem:[#allocation2 + $0x50] ss:$8 sps:$4 sm:$0xff]  }
 0x317   : > { %1595 = vmatprep.subr.bf16.mxu1 %v2516_v55 }
 0x31a   : > { %1596 = vmatpush1.bf16.msra.mxu1 %v2514_v56 }
 0x31b   : > { %1597 = vmatprep.subr.bf16.mxu1 %v2519_v58 }
 0x31d   : > { %1331 = vmatmul.mubr.bf16.gmra.mrb[60].mxu0 %v957_v37 }
 0x31e   : > { %1598 = vmatpush1.bf16.msra.mxu1 %v2517_v57 }
 0x31f   : > { %1599 = vmatprep.subr.bf16.mxu1 %v2522_v59 }
 0x322   : > { %1600 = vmatpush1.bf16.msra.mxu1 %v2520_v60 }
 0x323   : > { %1601 = vmatprep.subr.bf16.mxu1 %v2525_v62 }
 0x326   : > { %1602 = vmatpush1.bf16.msra.mxu1 %v2523_v61 }
 0x327   : > { %1603 = vmatprep.subr.bf16.mxu1 %v2528_v63 }
 0x32a   : > { %1604 = vmatpush1.bf16.msra.mxu1 %v2526_v25 }
 0x32b   : > { %1605 = vmatprep.subr.bf16.mxu1 %v2531_v1 }
 0x32e   : > { %1606 = vmatpush1.bf16.msra.mxu1 %v2529_v0 }
 0x32f   : > { %1607 = vmatprep.subr.bf16.mxu1 %v2534_v2 }
 0x332   : > { %1608 = vmatpush1.bf16.msra.mxu1 %v2532_v3 }
 0x333   : > { %1609 = vmatprep.subr.bf16.mxu1 %v2537_v5 }
 0x336   : > { %1610 = vmatpush1.bf16.msra.mxu1 %v2535_v4 }
 0x337   : > { %1611 = vmatprep.subr.bf16.mxu1 %v2540_v6 }
 0x33a   : > { %1612 = vmatpush1.bf16.msra.mxu1 %v2538_v7 }
 0x33b   : > { %1613 = vmatprep.subr.bf16.mxu1 %v2543_v9 }
 0x33e   : > { %1614 = vmatpush1.bf16.msra.mxu1 %v2541_v8 }
 0x33f   : > { %1615 = vmatprep.subr.bf16.mxu1 %v2546_v10 }
 0x342   : > { %1616 = vmatpush1.bf16.msra.mxu1 %v2544_v11 }
 0x343   : > { %1617 = vmatprep.subr.bf16.mxu1 %v2549_v13 }
 0x346   : > { %1618 = vmatpush1.bf16.msra.mxu1 %v2547_v12 }
 0x347   : > { %1619 = vmatprep.subr.bf16.mxu1 %v2552_v14 }
 0x34a   : > { %1620 = vmatpush1.bf16.msra.mxu1 %v2550_v15 }
 0x34b   : > { %1621 = vmatprep.subr.bf16.mxu1 %v2555_v16 }
 0x34e   : > { %1622 = vmatpush1.bf16.msra.mxu1 %v2553_v18 }
 0x34f   : > { %1623 = vmatprep.subr.bf16.mxu1 %v2558_v19 }
 0x352   : > { %1624 = vmatpush1.bf16.msra.mxu1 %v2556_v20 }
 0x3b8   : > { %v1262_v21 = vpop.f32.mrb[32].mxu0 }
 0x3b9   : > { %v1264_v17 = vpop.f32.mrb[33].mxu0 }
 0x3ba   : > { %v1266_v22 = vpop.f32.mrb[34].mxu0 }
 0x3bb   : > { %v1268_v23 = vpop.f32.mrb[35].mxu0 }
 0x3c0   : > { %v2980_v24 = vpop.f32.mrb[36].mxu0 }
 0x3c1   : > { %v1274_v26 = vpop.f32.mrb[37].mxu0 }
 0x3c2   : > { %v2982_v27 = vpop.f32.mrb[38].mxu0 }
 0x3c3   : > { %v1278_v28 = vpop.f32.mrb[39].mxu0 }
 0x3c8   : > { %v2984_v29 = vpop.f32.mrb[40].mxu0 }
 0x3c9   : > { %v2986_v30 = vpop.f32.mrb[41].mxu0 }
 0x3ca   : > { %v2988_v31 = vpop.f32.mrb[42].mxu0 }
 0x3cb   : > { %v2990_v32 = vpop.f32.mrb[43].mxu0 }
 0x3d0   : > { %v2992_v33 = vpop.f32.mrb[44].mxu0 }
 0x3d1   : > { %v2994_v34 = vpop.f32.mrb[45].mxu0 }
 0x3d2   : > { %v2996_v35 = vpop.f32.mrb[46].mxu0 }
 0x3d3   : > { %v2998_v36 = vpop.f32.mrb[47].mxu0 }
 0x3d8   : > { %v3000_v37 = vpop.f32.mrb[48].mxu0 }
 0x3d9   : > { %v3002_v38 = vpop.f32.mrb[49].mxu0 }
 0x3da   : > { %v3004_v40 = vpop.f32.mrb[50].mxu0 }
 0x3db   : > { %v3006_v41 = vpop.f32.mrb[51].mxu0 }
 0x3e0   : > { %v3010_v44 = vpop.f32.mrb[52].mxu0 }
 0x3e1   : > { %v3012_v45 = vpop.f32.mrb[53].mxu0 }
 0x3e2   : > { %v3017_v47 = vpop.f32.mrb[54].mxu0 }
 0x3e3   : > { %v3023_v49 = vpop.f32.mrb[55].mxu0 }
 0x3e8   : > { %v1133_v52 = vpop.f32.mrb[16].mxu1  ;;  %v1322_v53 = vpop.f32.mrb[56].mxu0 }
 0x3e9   : > { %v1134_v54 = vadd.f32 %v1133_v52, %v1092_v50  ;;  %v1135_v55 = vpop.f32.mrb[17].mxu1  ;;  %v1324_v56 = vpop.f32.mrb[57].mxu0 }
 0x3ea   : > { %v1136_v57 = vadd.f32 %v1135_v55, %v1096_v51  ;;  %v1137_v58 = vpop.f32.mrb[18].mxu1  ;;  %v1326_v59 = vpop.f32.mrb[58].mxu0 }
 0x3eb   : > { %v3029_v60 = vrot.slane %v1134_v54, %v3015_v46  ;;  %v1138_v61 = vpop.f32.mrb[19].mxu1  ;;  %v1328_v62 = vpop.f32.mrb[59].mxu0 }
 0x3ec   : > { %v3032_v63 = vrot.slane %v1136_v57, %v3015_v46 }
 0x3ed   : > { %v1323_v25 = vadd.f32 %v1322_v53, %v3029_v60  ;;  %v1327_v0 = vadd.f32 %v1326_v59, %v3029_v60  ;;  %v1263_v1 = vadd.f32 %v1262_v21, %v3029_v60  ;;  %v1267_v2 = vadd.f32 %v1266_v22, %v3029_v60 }
 0x3ee   : > { %v1325_v3 = vadd.f32 %v1324_v56, %v3032_v63  ;;  %v1329_v4 = vadd.f32 %v1328_v62, %v3032_v63  ;;  %v1265_v5 = vadd.f32 %v1264_v17, %v3032_v63  ;;  %v1269_v6 = vadd.f32 %v1268_v23, %v3032_v63 }
 0x3ef   : > { %v1365_v7 = vmax.f32 %v1323_v25, 0.0  ;;  %v1367_v8 = vmax.f32 %v1327_v0, 0.0  ;;  %v1341_v9 = vmax.f32 %v1263_v1, 0.0  ;;  %v1343_v10 = vmax.f32 %v1267_v2, 0.0 }
 0x3f0   : > { %v1366_v11 = vmax.f32 %v1325_v3, 0.0  ;;  %v1368_v12 = vmax.f32 %v1329_v4, 0.0  ;;  %v1332_v13 = vpop.f32.mrb[60].mxu0  ;;  %v1342_v14 = vmax.f32 %v1265_v5, 0.0  ;;  %v1344_v15 = vmax.f32 %v1269_v6, 0.0 }
 0x3f1   : > { %v3042_v16 = vpack.c.bf16 %v1367_v8, %v1365_v7  ;;  %v1333_v18 = vadd.f32 %v1332_v13, %v3029_v60  ;;  %v1334_v19 = vpop.f32.mrb[61].mxu0  ;;  %v1373_v20 = vpack.c.bf16 %v1343_v10, %v1341_v9  ;;  %v1275_v21 = vadd.f32 %v1274_v26, %v3032_v63 }
 0x3f2   : > { %v3046_v17 = vpack.c.bf16 %v1368_v12, %v1366_v11  ;;  %v1335_v22 = vadd.f32 %v1334_v19, %v3032_v63  ;;  %v1336_v23 = vpop.f32.mrb[62].mxu0  ;;  %v1374_v39 = vpack.c.bf16 %v1344_v15, %v1342_v14  ;;  %v1279_v43 = vadd.f32 %v1278_v28, %v3032_v63 }
 0x3f3   : > { %v1369_v50 = vmax.f32 %v1333_v18, 0.0  ;;  %v1337_v51 = vadd.f32 %v1336_v23, %v3029_v60  ;;  %v1338_v52 = vpop.f32.mrb[63].mxu0  ;;  %v1346_v53 = vmax.f32 %v1275_v21, 0.0  ;;  %v1273_v54 = vadd.f32 %v2980_v24, %v3029_v60 }
 0x3f4   : > { %v1370_v55 = vmax.f32 %v1335_v22, 0.0  ;;  %v1339_v56 = vadd.f32 %v1338_v52, %v3032_v63  ;;  %1625 = vmatprep.mubr.bf16.mxu1 %v1374_v39  ;;  %v1348_v26 = vmax.f32 %v1279_v43, 0.0  ;;  %v1277_v57 = vadd.f32 %v2982_v27, %v3029_v60 }
 0x3f5   : > { %v1371_v58 = vmax.f32 %v1337_v51, 0.0  ;;  %1626 = vmatmul.mubr.bf16.vlgmr.msra.gmra.mrb[20].mxu1 %v1373_v20  ;;  %v1345_v59 = vmax.f32 %v1273_v54, 0.0  ;;  %v1285_v28 = vadd.f32 %v2986_v30, %v3032_v63  ;;  %v1289_v61 = vadd.f32 %v2990_v32, %v3032_v63  ;;  %v1798_v54 = vld [vmem:[#allocation4 + $0x90] sm:$0xff] }
 0x3f6   : > { %v1372_v62 = vmax.f32 %v1339_v56, 0.0  ;;  %v1376_v25 = vpack.c.bf16 %v1348_v26, %v1346_v53  ;;  %v1347_v24 = vmax.f32 %v1277_v57, 0.0  ;;  %v1283_v0 = vadd.f32 %v2984_v29, %v3029_v60  ;;  %v1782_v56 = vld [vmem:[#allocation4 + $0x10] sm:$0xff]  ;;  %v1783_v57 = vld [vmem:[#allocation4 + $0x18] sm:$0xff] }
 0x3f7   : > { %v1387_v1 = vpack.c.bf16 %v1371_v58, %v1369_v50  ;;  %v1350_v2 = vmax.f32 %v1285_v28, 0.0  ;;  %v1352_v3 = vmax.f32 %v1289_v61, 0.0  ;;  %v1287_v27 = vadd.f32 %v2988_v31, %v3029_v60  ;;  %v1785_v61 = vld [vmem:[#allocation4 + $0x28] sm:$0xff] }
 0x3f8   : > { %v1388_v4 = vpack.c.bf16 %v1372_v62, %v1370_v55  ;;  %1635 = vmatprep.mubr.bf16.mxu1 %v1376_v25  ;;  %v1375_v5 = vpack.c.bf16 %v1347_v24, %v1345_v59  ;;  %v1349_v6 = vmax.f32 %v1283_v0, 0.0  ;;  %v1295_v30 = vadd.f32 %v2994_v34, %v3032_v63  ;;  %v1799_v55 = vld [vmem:[#allocation4 + $0x98] sm:$0xff]  ;;  %v1784_v59 = vld [vmem:[#allocation4 + $0x20] sm:$0xff]  ;;  %v1802_v25 = vld [vmem:[#allocation4 + $0xb0] sm:$0xff] }
 0x3f9   : > { %v1378_v32 = vpack.c.bf16 %v1352_v3, %v1350_v2  ;;  %v1351_v7 = vmax.f32 %v1287_v27, 0.0  ;;  %v1299_v8 = vadd.f32 %v2998_v36, %v3032_v63  ;;  %v1293_v29 = vadd.f32 %v2992_v33, %v3029_v60  ;;  %v1803_v24 = vld [vmem:[#allocation4 + $0xb8] sm:$0xff]  ;;  %v1786_v0 = vld [vmem:[#allocation4 + $0x30] sm:$0xff]  ;;  %v1804_v27 = vld [vmem:[#allocation4 + $0xc0] sm:$0xff] }
 0x3fa   : > { %v1354_v9 = vmax.f32 %v1295_v30, 0.0  ;;  %v1297_v10 = vadd.f32 %v2996_v35, %v3029_v60  ;;  %v1305_v31 = vadd.f32 %v3002_v38, %v3032_v63  ;;  %v1309_v11 = vadd.f32 %v3006_v41, %v3032_v63  ;;  %v1787_v2 = vld [vmem:[#allocation4 + $0x38] sm:$0xff]  ;;  %v1789_v30 = vld [vmem:[#allocation4 + $0x48] sm:$0xff] }
 0x3fb   : > { %v1377_v12 = vpack.c.bf16 %v1351_v7, %v1349_v6  ;;  %v1356_v34 = vmax.f32 %v1299_v8, 0.0  ;;  %v1353_v13 = vmax.f32 %v1293_v29, 0.0  ;;  %v1303_v14 = vadd.f32 %v3000_v37, %v3029_v60  ;;  %v1806_v7 = vld [vmem:[#allocation4 + $0xd0] sm:$0xff]  ;;  %v1807_v8 = vld [vmem:[#allocation4 + $0xd8] sm:$0xff] }
 0x3fc   : > { %v1355_v36 = vmax.f32 %v1297_v10, 0.0  ;;  %v1358_v15 = vmax.f32 %v1305_v31, 0.0  ;;  %v1360_v18 = vmax.f32 %v1309_v11, 0.0  ;;  %v1307_v33 = vadd.f32 %v3004_v40, %v3029_v60  ;;  %v1790_v29 = vld [vmem:[#allocation4 + $0x50] sm:$0xff]  ;;  %v1791_v10 = vld [vmem:[#allocation4 + $0x58] sm:$0xff]  ;;  %v1808_v31 = vld [vmem:[#allocation4 + $0xe0] sm:$0xff] }
 0x3fd   : > { %1636 = vmatmul.mubr.bf16.gmra.mrb[24].mxu1 %v1375_v5  ;;  %v1380_v35 = vpack.c.bf16 %v1356_v34, %v1354_v9  ;;  %v1357_v19 = vmax.f32 %v1303_v14, 0.0  ;;  %v1315_v38 = vadd.f32 %v3012_v45, %v3032_v63  ;;  %v1319_v41 = vadd.f32 %v3023_v49, %v3032_v63  ;;  %v1780_v49 = vld [vmem:[#allocation4] sm:$0xff]  ;;  %v1781_v63 = vld [vmem:[#allocation4 + $0x8] sm:$0xff] }
 0x3fe   : > { %1645 = vmatprep.mubr.bf16.mxu1 %v1378_v32  ;;  %v1379_v20 = vpack.c.bf16 %v1355_v36, %v1353_v13  ;;  %v1382_v21 = vpack.c.bf16 %v1360_v18, %v1358_v15  ;;  %v1359_v22 = vmax.f32 %v1307_v33, 0.0  ;;  %v1313_v37 = vadd.f32 %v3010_v44, %v3029_v60  ;;  %v1796_v44 = vld [vmem:[#allocation4 + $0x80] sm:$0xff]  ;;  %v1809_v11 = vld [vmem:[#allocation4 + $0xe8] sm:$0xff]  ;;  %v1810_v36 = vld [vmem:[#allocation4 + $0xf0] sm:$0xff] }
 0x3ff   : > { %v1362_v23 = vmax.f32 %v1315_v38, 0.0  ;;  %v1364_v39 = vmax.f32 %v1319_v41, 0.0  ;;  %v1317_v40 = vadd.f32 %v3017_v47, %v3029_v60  ;;  %v1797_v47 = vld [vmem:[#allocation4 + $0x88] sm:$0xff]  ;;  %v2368_v53 = vpack.c.bf16 %v1781_v63, %v1780_v49  ;;  %v1788_v5 = vld [vmem:[#allocation4 + $0x40] sm:$0xff]  ;;  %v1811_v15 = vld [vmem:[#allocation4 + $0xf8] sm:$0xff] }
 0x400   : > { %v1381_v43 = vpack.c.bf16 %v1359_v22, %v1357_v19  ;;  %v1361_v50 = vmax.f32 %v1313_v37, 0.0  ;;  %v2366_v60 = vpack.c.bf16 %v1797_v47, %v1796_v44  ;;  %v2370_v26 = vpack.c.bf16 %v1799_v55, %v1798_v54  ;;  %v1792_v13 = vld [vmem:[#allocation4 + $0x60] sm:$0xff]  ;;  %v1793_v14 = vld [vmem:[#allocation4 + $0x68] sm:$0xff]  ;;  %v1795_v19 = vld [vmem:[#allocation4 + $0x78] sm:$0xff] }
 0x401   : > { %v1384_v51 = vpack.c.bf16 %v1364_v39, %v1362_v23  ;;  %v1363_v52 = vmax.f32 %v1317_v40, 0.0  ;;  %v2372_v58 = vpack.c.bf16 %v1783_v57, %v1782_v56  ;;  %v2376_v62 = vpack.c.bf16 %v1785_v61, %v1784_v59 }
 0x402   : > { %2367 = vmatprep.subr.bf16.mxu0 %v2366_v60  ;;  %v2380_v3 = vpack.c.bf16 %v1787_v2, %v1786_v0  ;;  %v2384_v32 = vpack.c.bf16 %v1789_v30, %v1788_v5  ;;  %v2386_v9 = vpack.c.bf16 %v1807_v8, %v1806_v7  ;;  %v2390_v34 = vpack.c.bf16 %v1809_v11, %v1808_v31 }
 0x403   : > { %v1383_v45 = vpack.c.bf16 %v1363_v52, %v1361_v50  ;;  %2369 = vmatpush3.bf16.msra.mxu0 %v2368_v53  ;;  %v2392_v18 = vpack.c.bf16 %v1793_v14, %v1792_v13  ;;  %v2394_v33 = vpack.c.bf16 %v1811_v15, %v1810_v36  ;;  %v2638_v41 = vmov 0.0|0.0  }
 0x404   : > { %2371 = vmatprep.subr.bf16.mxu0 %v2370_v26 }
 0x405   : > { %1646 = vmatmul.mubr.bf16.gmra.mrb[28].mxu1 %v1377_v12  ;;  %v2388_v12 = vpack.c.bf16 %v1791_v10, %v1790_v29 }
 0x406   : > { %1655 = vmatprep.mubr.bf16.mxu1 %v1380_v35  ;;  %v1794_v35 = vld [vmem:[#allocation4 + $0x70] sm:$0xff] }
 0x407   : > { %2373 = vmatpush3.bf16.msra.mxu0 %v2372_v58  ;;  %v2396_v38 = vpack.c.bf16 %v1795_v19, %v1794_v35 }
 0x40d   : > { %1656 = vmatmul.mubr.bf16.gmra.mrb[32].mxu1 %v1379_v20  ;;  %v1421_v20 = vld [vmem:[%s3221_s1 + $0x5] sm:$0x3] }
 0x40e   : > { %1665 = vmatprep.mubr.bf16.mxu1 %v1382_v21  ;;  %v3096_v21 = vrot.slane %v1421_v20, %v1095_v48 }
 0x415   : > { %1666 = vmatmul.mubr.bf16.gmra.mrb[36].mxu1 %v1381_v43 }
 0x416   : > { %1675 = vmatprep.mubr.bf16.mxu1 %v1384_v51 }
 0x41d   : > { %1676 = vmatmul.mubr.bf16.gmra.mrb[40].mxu1 %v1383_v45 }
 0x41e   : > { %1685 = vmatprep.mubr.bf16.mxu1 %v3046_v17  ;;  %v1800_v17 = vld [vmem:[#allocation4 + $0xa0] sm:$0xff] }
 0x425   : > { %1686 = vmatmul.mubr.bf16.gmra.mrb[44].mxu1 %v3042_v16  ;;  %v1801_v16 = vld [vmem:[#allocation4 + $0xa8] sm:$0xff] }
 0x426   : > { %1695 = vmatprep.mubr.bf16.mxu1 %v1388_v4  ;;  %v2374_v28 = vpack.c.bf16 %v1801_v16, %v1800_v17  ;;  %v1805_v4 = vld [vmem:[#allocation4 + $0xc8] sm:$0xff] }
 0x427   : > { %v2382_v6 = vpack.c.bf16 %v1805_v4, %v1804_v27 }
 0x428   : > { %2375 = vmatprep.subr.bf16.mxu0 %v2374_v28 }
 0x429   : > { %2377 = vmatpush3.bf16.msra.mxu0 %v2376_v62 }
 0x42d   : > { %1696 = vmatmul.mubr.bf16.gmra.mrb[48].mxu1 %v1387_v1  ;;  %v2378_v1 = vpack.c.bf16 %v1803_v24, %v1802_v25 }
 0x42f   : > { %2379 = vmatprep.subr.bf16.mxu0 %v2378_v1  ;;  %v3110_v1 = vrot.slane %v1421_v20, %v3015_v46 }
 0x430   : > { %2381 = vmatpush3.bf16.msra.mxu0 %v2380_v3 }
 0x431   : > { %2383 = vmatprep.subr.bf16.mxu0 %v2382_v6 }
 0x434   : > { %2385 = vmatpush3.bf16.msra.mxu0 %v2384_v32 }
 0x435   : > { %2387 = vmatprep.subr.bf16.mxu0 %v2386_v9 }
 0x438   : > { %2389 = vmatpush3.bf16.msra.mxu0 %v2388_v12 }
 0x439   : > { %2391 = vmatprep.subr.bf16.mxu0 %v2390_v34 }
 0x43c   : > { %2393 = vmatpush3.bf16.msra.mxu0 %v2392_v18 }
 0x43d   : > { %2395 = vmatprep.subr.bf16.mxu0 %v2394_v33 }
 0x440   : > { %2397 = vmatpush3.bf16.msra.mxu0 %v2396_v38 }
 0x441   : > { %2398 = vmatprep.subr.bf16.mxu0 %v2638_v41 }
 0x4c8   : > { %v1627_v22 = vpop.f32.mrb[20].mxu1 }
 0x4c9   : > { %v1629_v37 = vpop.f32.mrb[21].mxu1  ;;  %v1628_v6 = vadd.f32 %v1627_v22, %v3110_v1 }
 0x4ca   : > { %v1630_v23 = vadd.f32 %v1629_v37, %v3096_v21  ;;  %v1631_v39 = vpop.f32.mrb[22].mxu1 }
 0x4cb   : > { %v1633_v40 = vpop.f32.mrb[23].mxu1  ;;  %v1632_v7 = vadd.f32 %v1631_v39, %v3110_v1  ;;  %v1706_v46 = vmax.f32 %v1628_v6, 0.0 }
 0x4cc   : > { %v1634_v43 = vadd.f32 %v1633_v40, %v3096_v21  ;;  %v1707_v50 = vmax.f32 %v1630_v23, 0.0 }
 0x4cd   : > { %v1708_v14 = vmax.f32 %v1632_v7, 0.0 }
 0x4ce   : > { %v1709_v51 = vmax.f32 %v1634_v43, 0.0 }
 0x4d0   : > { %v1739_v52 = vmax.f32 %v1707_v50, %v1709_v51  ;;  %v1637_v45 = vpop.f32.mrb[24].mxu1 }
 0x4d1   : > { %v1639_v44 = vpop.f32.mrb[25].mxu1  ;;  %v1638_v35 = vadd.f32 %v1637_v45, %v3110_v1 }
 0x4d2   : > { %v1640_v47 = vadd.f32 %v1639_v44, %v3096_v21  ;;  %v1641_v49 = vpop.f32.mrb[26].mxu1 }
 0x4d3   : > { %v1643_v60 = vpop.f32.mrb[27].mxu1  ;;  %v1642_v22 = vadd.f32 %v1641_v49, %v3110_v1  ;;  %v1710_v43 = vmax.f32 %v1638_v35, 0.0 }
 0x4d4   : > { %v1711_v42 = vmax.f32 %v1640_v47, 0.0  ;;  %v1644_v48 = vadd.f32 %v1643_v60, %v3096_v21 }
 0x4d5   : > { %v1712_v47 = vmax.f32 %v1642_v22, 0.0 }
 0x4d6   : > { %v1741_v63 = vmax.f32 %v1711_v42, %v1739_v52  ;;  %v1713_v53 = vmax.f32 %v1644_v48, 0.0 }
 0x4d8   : > { %v1743_v54 = vmax.f32 %v1713_v53, %v1741_v63  ;;  %v1647_v55 = vpop.f32.mrb[28].mxu1 }
 0x4d9   : > { %v1649_v56 = vpop.f32.mrb[29].mxu1  ;;  %v1648_v49 = vadd.f32 %v1647_v55, %v3110_v1 }
 0x4da   : > { %v1650_v26 = vadd.f32 %v1649_v56, %v3096_v21  ;;  %v1651_v57 = vpop.f32.mrb[30].mxu1 }
 0x4db   : > { %v1653_v58 = vpop.f32.mrb[31].mxu1 }
 0x4dc   : > { %v1715_v17 = vmax.f32 %v1650_v26, 0.0  ;;  %v1654_v16 = vadd.f32 %v1653_v58, %v3096_v21  ;;  %v1652_v26 = vadd.f32 %v1651_v57, %v3110_v1 }
 0x4de   : > { %v1745_v59 = vmax.f32 %v1715_v17, %v1743_v54  ;;  %v1717_v28 = vmax.f32 %v1654_v16, 0.0  ;;  %v1716_v55 = vmax.f32 %v1652_v26, 0.0  ;;  %v1888_v26 = vld [vmem:[%s3228_s8 + $0x20] sm:$0xff] }
 0x4e0   : > { %v1747_v61 = vmax.f32 %v1717_v28, %v1745_v59  ;;  %v3104_v62 = vpop.f32.mrb[32].mxu1  ;;  %v1714_v28 = vmax.f32 %v1648_v49, 0.0 }
 0x4e1   : > { %v1659_v25 = vpop.f32.mrb[33].mxu1  ;;  %v1658_v57 = vadd.f32 %v3104_v62, %v3110_v1 }
 0x4e2   : > { %v1660_v24 = vadd.f32 %v1659_v25, %v3096_v21  ;;  %v3107_v0 = vpop.f32.mrb[34].mxu1 }
 0x4e3   : > { %v1663_v2 = vpop.f32.mrb[35].mxu1 }
 0x4e4   : > { %v1719_v3 = vmax.f32 %v1660_v24, 0.0  ;;  %v1664_v27 = vadd.f32 %v1663_v2, %v3096_v21 }
 0x4e6   : > { %v1755_v4 = vmax.f32 %v1719_v3, %v1747_v61  ;;  %v1721_v5 = vmax.f32 %v1664_v27, 0.0 }
 0x4e8   : > { %v1749_v30 = vmax.f32 %v1721_v5, %v1755_v4  ;;  %v1667_v32 = vpop.f32.mrb[36].mxu1 }
 0x4e9   : > { %v1668_v8 = vadd.f32 %v1667_v32, %v3110_v1  ;;  %v1669_v29 = vpop.f32.mrb[37].mxu1 }
 0x4ea   : > { %v1670_v9 = vadd.f32 %v1669_v29, %v3096_v21  ;;  %v1671_v10 = vpop.f32.mrb[38].mxu1  ;;  %v1662_v29 = vadd.f32 %v3107_v0, %v3110_v1 }
 0x4eb   : > { %v1722_v31 = vmax.f32 %v1668_v8, 0.0  ;;  %v1672_v11 = vadd.f32 %v1671_v10, %v3110_v1  ;;  %v1673_v12 = vpop.f32.mrb[39].mxu1 }
 0x4ec   : > { %v1723_v34 = vmax.f32 %v1670_v9, 0.0  ;;  %v1674_v13 = vadd.f32 %v1673_v12, %v3096_v21  ;;  %v1718_v12 = vmax.f32 %v1658_v57, 0.0  ;;  %v1899_v57 = vld [vmem:[%s3228_s8 + $0x78] sm:$0xff] }
 0x4ed   : > { %v3119_v36 = vmax.f32 %v1706_v46, %v1722_v31  ;;  %v1724_v15 = vmax.f32 %v1672_v11, 0.0 }
 0x4ee   : > { %v1757_v18 = vmax.f32 %v1723_v34, %v1749_v30  ;;  %v1725_v33 = vmax.f32 %v1674_v13, 0.0 }
 0x4ef   : > { %v3122_v19 = vmax.f32 %v1708_v14, %v1724_v15  ;;  %v1720_v15 = vmax.f32 %v1662_v29, 0.0 }
 0x4f0   : > { %v1751_v38 = vmax.f32 %v1725_v33, %v1757_v18  ;;  %v1677_v20 = vpop.f32.mrb[40].mxu1 }
 0x4f1   : > { %v1678_v37 = vadd.f32 %v1677_v20, %v3110_v1  ;;  %v1679_v23 = vpop.f32.mrb[41].mxu1 }
 0x4f2   : > { %v1680_v39 = vadd.f32 %v1679_v23, %v3096_v21  ;;  %v1681_v40 = vpop.f32.mrb[42].mxu1 }
 0x4f3   : > { %v1726_v50 = vmax.f32 %v1678_v37, 0.0  ;;  %v1682_v51 = vadd.f32 %v1681_v40, %v3110_v1  ;;  %v1683_v52 = vpop.f32.mrb[43].mxu1 }
 0x4f4   : > { %v1727_v44 = vmax.f32 %v1680_v39, 0.0  ;;  %v1684_v45 = vadd.f32 %v1683_v52, %v3096_v21 }
 0x4f5   : > { %v1742_v60 = vmax.f32 %v1710_v43, %v1726_v50  ;;  %v1728_v42 = vmax.f32 %v1682_v51, 0.0 }
 0x4f6   : > { %v1759_v48 = vmax.f32 %v1727_v44, %v1751_v38  ;;  %v1729_v63 = vmax.f32 %v1684_v45, 0.0 }
 0x4f7   : > { %v1744_v53 = vmax.f32 %v1712_v47, %v1728_v42  ;;  %v1885_v42 = vld [vmem:[%s3228_s8 + $0x8] sm:$0xff] }
 0x4f8   : > { %v1763_v54 = vmax.f32 %v1729_v63, %v1759_v48  ;;  %v1687_v56 = vpop.f32.mrb[44].mxu1 }
 0x4f9   : > { %v1688_v58 = vadd.f32 %v1687_v56, %v3110_v1  ;;  %v1689_v17 = vpop.f32.mrb[45].mxu1 }
 0x4fa   : > { %v1690_v16 = vadd.f32 %v1689_v17, %v3096_v21  ;;  %v1691_v59 = vpop.f32.mrb[46].mxu1 }
 0x4fb   : > { %v1730_v61 = vmax.f32 %v1688_v58, 0.0  ;;  %v1692_v25 = vadd.f32 %v1691_v59, %v3110_v1  ;;  %v1693_v24 = vpop.f32.mrb[47].mxu1  ;;  %v1889_v58 = vld [vmem:[%s3228_s8 + $0x28] sm:$0xff]  ;;  %v1891_v59 = vld [vmem:[%s3228_s8 + $0x38] sm:$0xff] }
 0x4fc   : > { %v1731_v2 = vmax.f32 %v1690_v16, 0.0  ;;  %v1694_v3 = vadd.f32 %v1693_v24, %v3096_v21  ;;  %v2405_v17 = vpack.c.bf16 %v1889_v58, %v1888_v26  ;;  %v1890_v16 = vld [vmem:[%s3228_s8 + $0x30] sm:$0xff] }
 0x4fd   : > { %v1746_v27 = vmax.f32 %v1714_v28, %v1730_v61  ;;  %v1732_v4 = vmax.f32 %v1692_v25, 0.0  ;;  %v2408_v28 = vpack.c.bf16 %v1891_v59, %v1890_v16  ;;  %v1892_v61 = vld [vmem:[%s3228_s8 + $0x40] sm:$0xff]  ;;  %v1893_v25 = vld [vmem:[%s3228_s8 + $0x48] sm:$0xff] }
 0x4fe   : > { %v1753_v5 = vmax.f32 %v1731_v2, %v1763_v54  ;;  %v1733_v6 = vmax.f32 %v1694_v3, 0.0  ;;  %v1887_v54 = vld [vmem:[%s3228_s8 + $0x18] sm:$0xff]  ;;  %v2411_v24 = vpack.c.bf16 %v1893_v25, %v1892_v61  ;;  %v1894_v2 = vld [vmem:[%s3228_s8 + $0x50] sm:$0xff] }
 0x4ff   : > { %v1754_v30 = vmax.f32 %v3119_v36, %v1746_v27  ;;  %v1748_v32 = vmax.f32 %v1716_v55, %v1732_v4  ;;  %v1895_v3 = vld [vmem:[%s3228_s8 + $0x58] sm:$0xff]  ;;  %v1896_v27 = vld [vmem:[%s3228_s8 + $0x60] sm:$0xff]  ;;  %v1897_v4 = vld [vmem:[%s3228_s8 + $0x68] sm:$0xff] }
 0x500   : > { %v1761_v7 = vmax.f32 %v1733_v6, %v1753_v5  ;;  %v1697_v8 = vpop.f32.mrb[48].mxu1  ;;  %v2414_v55 = vpack.c.bf16 %v1895_v3, %v1894_v2  ;;  %v1898_v5 = vld [vmem:[%s3228_s8 + $0x70] sm:$0xff]  ;;  %v2417_v6 = vpack.c.bf16 %v1897_v4, %v1896_v27 }
 0x501   : > { %v1756_v9 = vmax.f32 %v3122_v19, %v1748_v32  ;;  %v1698_v10 = vadd.f32 %v1697_v8, %v3110_v1  ;;  %v1699_v46 = vpop.f32.mrb[49].mxu1  ;;  %v2420_v32 = vpack.c.bf16 %v1899_v57, %v1898_v5  ;;  %v1812_v8 = vld [vmem:[%s3221_s1 + $0x7] sm:$0x1] }
 0x502   : > { %v1700_v31 = vadd.f32 %v1699_v46, %v3096_v21  ;;  %v1701_v11 = vpop.f32.mrb[50].mxu1 }
 0x503   : > { %v1734_v34 = vmax.f32 %v1698_v10, 0.0  ;;  %v1702_v62 = vadd.f32 %v1701_v11, %v3110_v1  ;;  %v1703_v13 = vpop.f32.mrb[51].mxu1 }
 0x504   : > { %v1735_v14 = vmax.f32 %v1700_v31, 0.0  ;;  %v1704_v36 = vadd.f32 %v1703_v13, %v3096_v21  ;;  %v1900_v31 = vld [vmem:[%s3221_s1 + $0x8] sm:$0x1] }
 0x505   : > { %v1750_v18 = vmax.f32 %v1718_v12, %v1734_v34  ;;  %v1736_v33 = vmax.f32 %v1702_v62, 0.0  ;;  %v1972_v34 = vld [vmem:[%s3221_s1 + $0xa] sm:$0x1] }
 0x506   : > { %v1765_v0 = vmax.f32 %v1735_v14, %v1761_v7  ;;  %v1737_v35 = vmax.f32 %v1704_v36, 0.0  ;;  %v1978_v36 = vld [vmem:[%s3221_s1 + $0x9] sm:$0x1] }
 0x507   : > { %v1758_v19 = vmax.f32 %v1742_v60, %v1750_v18  ;;  %v1752_v38 = vmax.f32 %v1720_v15, %v1736_v33  ;;  %v1884_v60 = vld [vmem:[%s3228_s8] sm:$0xff] }
 0x508   : > { %v1773_v20 = vmax.f32 %v1737_v35, %v1765_v0  ;;  %v2399_v63 = vpack.c.bf16 %v1885_v42, %v1884_v60 }
 0x509   : > { %v1762_v22 = vmax.f32 %v1754_v30, %v1758_v19  ;;  %v1760_v37 = vmax.f32 %v1744_v53, %v1752_v38  ;;  %v1886_v53 = vld [vmem:[%s3228_s8 + $0x10] sm:$0xff]  ;;  %v2640_v30 = vmov 0.0  }
 0x50a   : > { %v1774_v23 = vrot.slane %v1773_v20, 4  ;;  %v2402_v56 = vpack.c.bf16 %v1887_v54, %v1886_v53 }
 0x50b   : > { %v1764_v39 = vmax.f32 %v1756_v9, %v1760_v37 }
 0x50c   : > { %v1775_v40 = vmax.f32 %v1773_v20, %v1774_v23 }
 0x50d   : > { %v1766_v43 = vmax.f32 %v1762_v22, %v1764_v39 }
 0x50e   : > { %v1776_v50 = vrot.slane %v1775_v40, 2 }
 0x50f   : > { %v1767_v1 = vrot.slane %v1766_v43, 4 }
 0x510   : > { %v1777_v51 = vmax.f32 %v1775_v40, %v1776_v50 }
 0x511   : > { %v1768_v52 = vmax.f32 %v1766_v43, %v1767_v1 }
 0x512   : > { %v1778_v44 = vrot.slane %v1777_v51, 1 }
 0x513   : > { %v1769_v21 = vrot.slane %v1768_v52, 2 }
 0x514   : > { %v1779_v45 = vmax.f32 %v1777_v51, %v1778_v44 }
 0x515   : > { %v1770_v47 = vmax.f32 %v1768_v52, %v1769_v21 }
 0x516   : > { %1877 = vmatprep.mubr.f32.mxu0 %v1779_v45 }
 0x517   : > { %v1771_v48 = vrot.slane %v1770_v47, 1 }
 0x519   : > { %v1772_v49 = vmax.f32 %v1770_v47, %v1771_v48 }
 0x51b   : > { %1878 = vmatmul.mubr.f32.vlgmr.msra.gmra.mrb[64].mxu0 %v1772_v49 }
 0x51c   : > { %2400 = vmatpush3.bf16.msra.mxu0 %v2399_v63  ;;  %2363 = vmatprep.mubr.msk.f32.mxu0 %vm2639_vm3, %v2640_v30 }
 0x51d   : > { %2401 = vmatprep.subr.bf16.mxu0 %v2638_v41 }
 0x520   : > { %2403 = vmatpush3.bf16.msra.mxu0 %v2402_v56 }
 0x521   : > { %2404 = vmatprep.subr.bf16.mxu0 %v2638_v41 }
 0x524   : > { %2406 = vmatpush3.bf16.msra.mxu0 %v2405_v17 }
 0x525   : > { %2407 = vmatprep.subr.bf16.mxu0 %v2638_v41 }
 0x528   : > { %2409 = vmatpush3.bf16.msra.mxu0 %v2408_v28 }
 0x529   : > { %2410 = vmatprep.subr.bf16.mxu0 %v2638_v41 }
 0x52c   : > { %2412 = vmatpush3.bf16.msra.mxu0 %v2411_v24 }
 0x52d   : > { %2413 = vmatprep.subr.bf16.mxu0 %v2638_v41 }
 0x530   : > { %2415 = vmatpush3.bf16.msra.mxu0 %v2414_v55 }
 0x531   : > { %2416 = vmatprep.subr.bf16.mxu0 %v2638_v41 }
 0x534   : > { %2418 = vmatpush3.bf16.msra.mxu0 %v2417_v6 }
 0x535   : > { %2419 = vmatprep.subr.bf16.mxu0 %v2638_v41 }
 0x538   : > { %2421 = vmatpush3.bf16.msra.mxu0 %v2420_v32 }
 0x5ee   : > { %v2241_v7 = vpop.f32.mrb[64].mxu0 }
 0x5ef   : > { %v2242_v29 = vpop.f32.mrb[65].mxu0 }
 0x5f0   : > { %v2243_v9 = vadd.f32 %v2242_v29, %v2241_v7 }
 0x5f2   : > { %v1880_v10 = vadd.f32 %v2243_v9, %v1812_v8 }
 0x5f4   : > { %v1883_v46 = vmax.f32 %v1880_v10, 0.0 }
 0x5f6   : > { %2364 = vmatmul.mubr.f32.vlgmr.msra.gmra.mrb[66].mxu0 %v1883_v46 }
 0x6c9   : > { %v1967_v11 = vpop.f32.mrb[66].mxu0 }
 0x6ca   : > { %v1968_v12 = vadd.f32 %v1967_v11, %v1900_v31  ;;  %v2365_v41 = vpop.f32.mrb[67].mxu0 }
 0x6cc   : > { %v1971_v62 = vmax.f32 %v1968_v12, 0.0 }
 0x6ce   : > { %v1973_v13 = vmul.f32 %v1972_v34, %v1971_v62 }
 0x6d0   : > { %v1975_v14 = vsel %vm1974_vm4, %v1973_v13, 0.0 }
 0x6d1   : > { %1976 = vadd.xlane.f32.xlu0 %v1975_v14 }
 0x75e   : > { %v1977_v15 = vpop.xlane.xlu0 %1976 }
 0x75f   : > { %v1979_v18 = vadd.f32 %v1978_v36, %v1977_v15 }
 0x761   : > { %2559 = vtanh.f32 %v1979_v18 }
 0x76b   : > { %v2560_v33 = vpop.eup %2559 }
 0x76c   : > { %1982 = vst.msk [vmem:[%s360_s13] sm:$0x1] %vm1981_vm5, %v2560_v33 }
 0x76d PF: > { %s21_s30 = sadd.s32 1, %s2631_s30  }
 0x76e   : > { %p18_p10 = scmp.ge.s32.totalorder %s21_s30, 4  }
 0x770   :  { %20 = sbr.rel (!%p18_p10) target bundleno = 2 (0x2), region = 95 }
 0x777   :  { %2000 = vsyncpa [#allocation3], 1 }
 0x778   :  { %2002 = vsyncpa [#allocation3 + $0x1], 1 }
 0x779   :  { %2003 = vsyncpa [#allocation5], 1 }

</bundles_post_ra>
